<compile_context>
chip_gen: v7x
topology: tpu7x:2x2x1
jax: 0.10.0
libtpu: 0.0.40
codegen_flags: <defaults>
</compile_context>

<pallas_src>
import functools

import jax
import jax.numpy as jnp
from jax.experimental import pallas as pl
from jax.experimental.pallas import tpu as pltpu


# ---------------------------------------------------------------------------
# Pallas kernels: generic tiled matmul, bf16 MXU inputs, f32 accumulation.
#   * f32 output  -> accumulate directly into the resident output block
#                    (output index_map independent of k; no VMEM scratch).
#   * bf16 output -> f32 VMEM scratch accumulator, cast only in the epilogue.
#   * optional fused bias + ReLU epilogue (bias passed as an (8, N) slab).
# ---------------------------------------------------------------------------
def _mm_f32_kernel(a_ref, b_ref, o_ref):
    @pl.when(pl.program_id(2) == 0)
    def _():
        o_ref[...] = jnp.zeros_like(o_ref)

    o_ref[...] += jnp.dot(a_ref[...], b_ref[...],
                          preferred_element_type=jnp.float32)


def _mm_f32_bias_relu_kernel(a_ref, b_ref, bias_ref, o_ref):
    @pl.when(pl.program_id(2) == 0)
    def _():
        o_ref[...] = jnp.zeros_like(o_ref)

    o_ref[...] += jnp.dot(a_ref[...], b_ref[...],
                          preferred_element_type=jnp.float32)

    @pl.when(pl.program_id(2) == pl.num_programs(2) - 1)
    def _():
        bias = bias_ref[...][0:1, :]  # rows identical; sublane broadcast
        o_ref[...] = jnp.maximum(o_ref[...] + bias, 0.0)


def _mm_acc_kernel(a_ref, b_ref, o_ref, acc_ref):
    k = pl.program_id(2)

    @pl.when(k == 0)
    def _():
        acc_ref[...] = jnp.zeros_like(acc_ref)

    acc_ref[...] += jnp.dot(a_ref[...], b_ref[...],
                            preferred_element_type=jnp.float32)

    @pl.when(k == pl.num_programs(2) - 1)
    def _():
        o_ref[...] = acc_ref[...].astype(o_ref.dtype)


def _mm_acc_bias_relu_kernel(a_ref, b_ref, bias_ref, o_ref, acc_ref):
    k = pl.program_id(2)

    @pl.when(k == 0)
    def _():
        acc_ref[...] = jnp.zeros_like(acc_ref)

    acc_ref[...] += jnp.dot(a_ref[...], b_ref[...],
                            preferred_element_type=jnp.float32)

    @pl.when(k == pl.num_programs(2) - 1)
    def _():
        bias = bias_ref[...][0:1, :]
        o_ref[...] = jnp.maximum(acc_ref[...] + bias, 0.0).astype(o_ref.dtype)


def _choose_tile(dim, max_tile, align=128):
    """Largest tile <= max_tile that divides dim (full dim if it already fits)."""
    if dim <= max_tile:
        return dim
    best = 0
    t = align
    while t <= max_tile:
        if dim % t == 0:
            best = t
        t += align
    # All padded dims are multiples of 128, so best >= 128; guard the perf cliff.
    assert best >= align, f"degenerate tile for dim={dim}, max_tile={max_tile}"
    return best


def tiled_matmul(a, b, bias_relu=None, *, out_dtype=jnp.float32,
                 tm_max=512, tn_max=512, tk_max=512):
    """o = a @ b (optionally ReLU(a @ b + bias)).

    Inputs must be padded: rows multiple of 8, last dims multiple of 128 (or the
    whole dim).  Operands are used as bf16 on the MXU (cast only if not already
    bf16); accumulation and the bias/ReLU epilogue stay f32.  `bias_relu`, if
    given, is an (8, N) f32 slab whose rows all equal the bias.
    """
    M, K = a.shape
    K2, N = b.shape
    assert K == K2, (a.shape, b.shape)
    out_dtype = jnp.dtype(out_dtype)

    tm = _choose_tile(M, tm_max)
    tn = _choose_tile(N, tn_max)
    tk = _choose_tile(K, tk_max)
    grid = (M // tm, N // tn, K // tk)

    a_bf = a if a.dtype == jnp.bfloat16 else a.astype(jnp.bfloat16)
    b_bf = b if b.dtype == jnp.bfloat16 else b.astype(jnp.bfloat16)

    in_specs = [
        pl.BlockSpec((tm, tk), lambda i, j, k: (i, k)),
        pl.BlockSpec((tk, tn), lambda i, j, k: (k, j)),
    ]
    args = [a_bf, b_bf]

    inplace = out_dtype == jnp.dtype(jnp.float32)
    if bias_relu is not None:
        in_specs.append(pl.BlockSpec((8, tn), lambda i, j, k: (0, j)))
        args.append(bias_relu.astype(jnp.float32))
        kernel = _mm_f32_bias_relu_kernel if inplace else _mm_acc_bias_relu_kernel
    else:
        kernel = _mm_f32_kernel if inplace else _mm_acc_kernel
    scratch = [] if inplace else [pltpu.VMEM((tm, tn), jnp.float32)]

    # VMEM budget from the actual tile footprint; clamp under 48 MiB so the same
    # tiling is safe on v7x's 64 MiB VMEM as well as v5e/v6e's 128 MiB.
    est = 2 * (tm * tk + tk * tn) * 2 + 2 * tm * tn * out_dtype.itemsize
    est += (tm * tn * 4 if scratch else 0) + 2 * 8 * tn * 4
    vmem_limit = int(min(48 * 1024 * 1024, max(32 * 1024 * 1024, 2 * est)))

    return pl.pallas_call(
        kernel,
        out_shape=jax.ShapeDtypeStruct((M, N), out_dtype),
        grid_spec=pltpu.PrefetchScalarGridSpec(
            num_scalar_prefetch=0,
            grid=grid,
            in_specs=in_specs,
            out_specs=pl.BlockSpec((tm, tn), lambda i, j, k: (i, j)),
            scratch_shapes=scratch,
        ),
        compiler_params=pltpu.CompilerParams(
            dimension_semantics=("parallel", "parallel", "arbitrary"),
            vmem_limit_bytes=vmem_limit,
        ),
    )(*args)


# ---------------------------------------------------------------------------
# Plain-JAX glue: padding, adjacency, augmentors, pooling matrix
# ---------------------------------------------------------------------------
def _round_up(x, m):
    return ((x + m - 1) // m) * m


def _pad_dim(n, lane=128, big=512):
    """Pad to a lane multiple; past one big tile, pad to a big-tile multiple so
    _choose_tile never falls back below `big` on that axis."""
    p = _round_up(n, lane)
    return p if p <= big else _round_up(n, big)


def _pad2(a, rows, cols):
    r, c = a.shape
    return jnp.pad(a, ((0, rows - r), (0, cols - c)))


def _bias_slab(b, width, offsets):
    """(8, width) f32 slab; bias replicated across sublanes at each lane offset."""
    slab = jnp.zeros((8, width), jnp.float32)
    for off in offsets:
        slab = slab.at[:, off:off + b.shape[0]].set(b[None, :])
    return slab


def normalized_adjacency(edge_index, edge_weight, num_nodes):
    """Dense D^-1/2 (A + I) D^-1/2 on the real (unpadded) node count."""
    src, dst = edge_index[0], edge_index[1]
    A = jnp.zeros((num_nodes, num_nodes), jnp.float32)
    A = A.at[dst, src].add(edge_weight)
    A = A + jnp.eye(num_nodes, dtype=jnp.float32)  # self loops
    deg = A.sum(axis=1)
    dinv = jnp.where(deg > 0, 1.0 / jnp.sqrt(deg), 0.0)
    return dinv[:, None] * A * dinv[None, :]


def aug_feature_mask(x, edge_index):
    """Deterministic FeatureMasking analogue: zero the even feature columns."""
    mask = (jnp.arange(x.shape[1]) % 2 == 1).astype(x.dtype)
    ew = jnp.ones((edge_index.shape[1],), jnp.float32)
    return x * mask[None, :], edge_index, ew


def aug_edge_drop(x, edge_index):
    """Deterministic EdgeRemoving analogue: zero-weight every other edge."""
    E = edge_index.shape[1]
    ew = (jnp.arange(E) % 2 == 0).astype(jnp.float32)
    return x, edge_index, ew


def make_pool_matrix(batch, num_graphs):
    onehot = (batch[None, :] == jnp.arange(num_graphs)[:, None]).astype(jnp.float32)
    counts = jnp.maximum(onehot.sum(axis=1, keepdims=True), 1.0)
    return onehot / counts


# ---------------------------------------------------------------------------
# Encoder.forward
# ---------------------------------------------------------------------------
@functools.partial(jax.jit, static_argnames=("num_graphs",))
def encoder_module_forward(params, x, edge_index, batch, num_graphs):
    N, F = x.shape
    H = params["W1"].shape[1]
    Npad = _pad_dim(N)
    Fpad = _pad_dim(F)
    Hpad = _pad_dim(H)
    Bpad = _round_up(num_graphs, 8)

    # Augmentations (deterministic analogues of the augmentor pair).
    feat_mask = (jnp.arange(F) % 2 == 1).astype(jnp.float32)   # aug1: feature mask
    x2, ei2, ew2 = aug_edge_drop(x, edge_index)                # aug2: edge drop
    ew0 = jnp.ones((edge_index.shape[1],), jnp.float32)

    # Adjacency of the clean view == view1 (feature masking keeps edges) ->
    # built once; cast to bf16 once and reused by both GCN layers.
    A_bf = _pad2(normalized_adjacency(edge_index, ew0, N),
                 Npad, Npad).astype(jnp.bfloat16)
    A2_bf = _pad2(normalized_adjacency(ei2, ew2, N),
                  Npad, Npad).astype(jnp.bfloat16)

    # Fold the view-1 feature mask into the weights: X @ [W1 | mask*W1] gives
    # the lane-concat [XW0 | XW1] slab directly (each half Hpad-aligned).
    W1 = params["W1"]
    W1cat = jnp.zeros((Fpad, 2 * Hpad), jnp.float32)
    W1cat = W1cat.at[:F, :H].set(W1)
    W1cat = W1cat.at[:F, Hpad:Hpad + H].set(feat_mask[:, None] * W1)

    # Block-diagonal [W2 0; 0 W2] so layer 2 needs no lane/row relayout.
    W2 = params["W2"]
    W2blk = jnp.zeros((2 * Hpad, 2 * Hpad), jnp.float32)
    W2blk = W2blk.at[:H, :H].set(W2)
    W2blk = W2blk.at[Hpad:Hpad + H, Hpad:Hpad + H].set(W2)
    W2p = _pad2(W2, Hpad, Hpad)

    b1cat = _bias_slab(params["b1"], 2 * Hpad, (0, Hpad))
    b2cat = _bias_slab(params["b2"], 2 * Hpad, (0, Hpad))
    b1s = _bias_slab(params["b1"], Hpad, (0,))
    b2s = _bias_slab(params["b2"], Hpad, (0,))

    Xp = _pad2(x, Npad, Fpad)

    # ----- layer 1 -----------------------------------------------------------
    XW01 = tiled_matmul(Xp, W1cat, out_dtype=jnp.bfloat16)          # [XW0 | XW1]
    XW2 = XW01[:, :Hpad]                                             # view-2 features == clean
    h01 = tiled_matmul(A_bf, XW01, bias_relu=b1cat, out_dtype=jnp.bfloat16)
    h2 = tiled_matmul(A2_bf, XW2, bias_relu=b1s, out_dtype=jnp.bfloat16)

    # ----- layer 2 -----------------------------------------------------------
    HW01 = tiled_matmul(h01, W2blk, out_dtype=jnp.bfloat16)         # [h0@W2 | h1@W2]
    HW2 = tiled_matmul(h2, W2p, out_dtype=jnp.bfloat16)
    z01 = tiled_matmul(A_bf, HW01, bias_relu=b2cat)                  # f32 final [z | z1]
    z2p = tiled_matmul(A2_bf, HW2, bias_relu=b2s)                    # f32 final z2

    # ----- global mean pool --------------------------------------------------
    P = _pad2(make_pool_matrix(batch, num_graphs), Bpad, Npad).astype(jnp.bfloat16)
    G01 = tiled_matmul(P, z01)                                       # (Bpad, 2*Hpad)
    G2 = tiled_matmul(P, z2p)                                        # (Bpad, Hpad)

    z = z01[:N, :H]
    z1 = z01[:N, Hpad:Hpad + H]
    z2 = z2p[:N, :H]
    g = G01[:num_graphs, :H]
    g1 = G01[:num_graphs, Hpad:Hpad + H]
    g2 = G2[:num_graphs, :H]
    return (z, g, z1, z2, g1, g2)


# ---------------------------------------------------------------------------
# Pure-JAX reference (f32) for correctness checking
# ---------------------------------------------------------------------------
def reference_forward(params, x, edge_index, batch, num_graphs):
    def enc(xv, ei, ew):
        A = normalized_adjacency(ei, ew, xv.shape[0])
        h = jnp.maximum(A @ (xv @ params["W1"]) + params["b1"][None, :], 0.0)
        zz = jnp.maximum(A @ (h @ params["W2"]) + params["b2"][None, :], 0.0)
        P = make_pool_matrix(batch, num_graphs)
        return zz, P @ zz

    x1, ei1, ew1 = aug_feature_mask(x, edge_index)
    x2, ei2, ew2 = aug_edge_drop(x, edge_index)
    ew0 = jnp.ones((edge_index.shape[1],), jnp.float32)
    z, g = enc(x, edge_index, ew0)
    z1, g1 = enc(x1, ei1, ew1)
    z2, g2 = enc(x2, ei2, ew2)
    return (z, g, z1, z2, g1, g2)


# ---------------------------------------------------------------------------
# Deterministic inputs + smoke test
# ---------------------------------------------------------------------------
def init_params(key, in_dim, hidden_dim):
    k1, k2 = jax.random.split(key)
    return {
        "W1": jax.random.normal(k1, (in_dim, hidden_dim), jnp.float32) / jnp.sqrt(in_dim),
        "b1": jnp.zeros((hidden_dim,), jnp.float32),
        "W2": jax.random.normal(k2, (hidden_dim, hidden_dim), jnp.float32) / jnp.sqrt(hidden_dim),
        "b2": jnp.zeros((hidden_dim,), jnp.float32),
    }


if __name__ == "__main__":
    key = jax.random.PRNGKey(0)
    kx, kp = jax.random.split(key)

    N, F, H, B = 16, 8, 32, 2  # nodes, features, hidden, graphs

    x = jax.random.normal(kx, (N, F), jnp.float32)

    # Two ring graphs of 8 nodes each (directed both ways) -> E = 32 edges.
    edges = []
    for gidx in range(B):
        off = gidx * (N // B)
        n = N // B
        for i in range(n):
            a, b = off + i, off + (i + 1) % n
            edges.append((a, b))
            edges.append((b, a))
    edge_index = jnp.asarray(edges, dtype=jnp.int32).T  # [2, E]

    batch = jnp.repeat(jnp.arange(B, dtype=jnp.int32), N // B)  # [N]
    params = init_params(kp, F, H)

    outs = encoder_module_forward(params, x, edge_index, batch, B)
    outs = jax.block_until_ready(outs)

    z, g, z1, z2, g1, g2 = outs
    assert z.shape == (N, H) and z1.shape == (N, H) and z2.shape == (N, H)
    assert g.shape == (B, H) and g1.shape == (B, H) and g2.shape == (B, H)
    assert all(bool(jnp.all(jnp.isfinite(o))) for o in outs)

    # Numerical check vs f32 reference (bf16 MXU inputs -> loose tolerance).
    refs = reference_forward(params, x, edge_index, batch, B)
    for o, r in zip(outs, refs):
        assert bool(jnp.allclose(o, r, rtol=5e-2, atol=5e-2)), (
            float(jnp.max(jnp.abs(o - r))))

    print("KERNEL_OK")
</pallas_src>

<mosaic_0001>
module attributes {stable_mosaic.version = 11 : i64} {
  func.func private @main(%arg0: i32) attributes {dimension_semantics = [#tpu.dimension_semantics<core_parallel>], iteration_bounds = array<i64: 2>, tpu.core_type = #tpu.core_type<sc_scalar_subcore>, window_params = []} {
    return
  }
}

module attributes {stable_mosaic.version = 11 : i64} {
  func.func private @main(%arg0: i32) attributes {dimension_semantics = [#tpu.dimension_semantics<core_parallel>], iteration_bounds = array<i64: 2>, tpu.core_type = #tpu.core_type<sc_scalar_subcore>, window_params = []} {
    return
  }
}

module attributes {stable_mosaic.version = 11 : i64} {
  func.func @_mm_acc_kernel(%arg0: i32, %arg1: i32, %arg2: i32, %arg3: memref<128x128xbf16, #tpu.memory_space<vmem>>, %arg4: memref<128x256xbf16, #tpu.memory_space<vmem>>, %arg5: memref<128x256xbf16, #tpu.memory_space<vmem>>, %arg6: memref<128x256xf32, #tpu.memory_space<vmem>>) attributes {dimension_semantics = [#tpu.dimension_semantics<parallel>, #tpu.dimension_semantics<parallel>, #tpu.dimension_semantics<arbitrary>], iteration_bounds = array<i64: 1, 1, 1>, scalar_prefetch = 0 : i64, scratch_operands = 1 : i64, tpu.core_type = #tpu.core_type<tc>, window_params = [{transform_indices = @transform_0, window_bounds = array<i64: 128, 128>}, {transform_indices = @transform_1, window_bounds = array<i64: 128, 256>}, {transform_indices = @transform_2, window_bounds = array<i64: 128, 256>}]} {
    %c0_i32 = arith.constant 0 : i32
    %0 = arith.cmpi eq, %arg2, %c0_i32 : i32
    %1 = arith.extui %0 : i1 to i32
    %c0_i32_0 = arith.constant 0 : i32
    %2 = arith.cmpi ne, %1, %c0_i32_0 : i32
    scf.if %2 {
      %cst_10 = arith.constant 0.000000e+00 : f32
      %12 = vector.broadcast %cst_10 : f32 to vector<128x256xf32>
      %c0_11 = arith.constant 0 : index
      %c0_12 = arith.constant 0 : index
      %13 = vector.load %arg6[%c0_11, %c0_12] : memref<128x256xf32, #tpu.memory_space<vmem>>, vector<128x256xf32>
      tpu.vector_store %arg6[%c0_11, %c0_12], %12 {strides = array<i32>} : memref<128x256xf32, #tpu.memory_space<vmem>>, vector<128x256xf32>,
    } else {
    }
    %c0 = arith.constant 0 : index
    %c0_1 = arith.constant 0 : index
    %3 = vector.load %arg6[%c0, %c0_1] : memref<128x256xf32, #tpu.memory_space<vmem>>, vector<128x256xf32>
    %c0_2 = arith.constant 0 : index
    %c0_3 = arith.constant 0 : index
    %4 = vector.load %arg3[%c0_2, %c0_3] : memref<128x128xbf16, #tpu.memory_space<vmem>>, vector<128x128xbf16>
    %c0_4 = arith.constant 0 : index
    %c0_5 = arith.constant 0 : index
    %5 = vector.load %arg4[%c0_4, %c0_5] : memref<128x256xbf16, #tpu.memory_space<vmem>>, vector<128x256xbf16>
    %cst = arith.constant dense<0.000000e+00> : vector<128x256xf32>
    %6 = tpu.matmul %4, %5, %cst {dimension_numbers = #tpu.dot_dimension_numbers<[1], [0], [0], [1], [0, 0, 1, 1], [], []>} : vector<128x128xbf16>, vector<128x256xbf16>, vector<128x256xf32> -> vector<128x256xf32>
    %7 = arith.addf %3, %6 : vector<128x256xf32>
    %c0_6 = arith.constant 0 : index
    %c0_7 = arith.constant 0 : index
    %8 = vector.load %arg6[%c0_6, %c0_7] : memref<128x256xf32, #tpu.memory_space<vmem>>, vector<128x256xf32>
    tpu.vector_store %arg6[%c0_6, %c0_7], %7 {strides = array<i32>} : memref<128x256xf32, #tpu.memory_space<vmem>>, vector<128x256xf32>,
    %c0_i32_8 = arith.constant 0 : i32
    %9 = arith.cmpi eq, %arg2, %c0_i32_8 : i32
    %10 = arith.extui %9 : i1 to i32
    %c0_i32_9 = arith.constant 0 : i32
    %11 = arith.cmpi ne, %10, %c0_i32_9 : i32
    scf.if %11 {
      %c0_10 = arith.constant 0 : index
      %c0_11 = arith.constant 0 : index
      %12 = vector.load %arg6[%c0_10, %c0_11] : memref<128x256xf32, #tpu.memory_space<vmem>>, vector<128x256xf32>
      %13 = arith.truncf %12 : vector<128x256xf32> to vector<128x256xbf16>
      %c0_12 = arith.constant 0 : index
      %c0_13 = arith.constant 0 : index
      %14 = vector.load %arg5[%c0_12, %c0_13] : memref<128x256xbf16, #tpu.memory_space<vmem>>, vector<128x256xbf16>
      tpu.vector_store %arg5[%c0_12, %c0_13], %13 {strides = array<i32>} : memref<128x256xbf16, #tpu.memory_space<vmem>>, vector<128x256xbf16>,
    } else {
    }
    return
  }
  func.func @transform_0(%arg0: i32, %arg1: i32, %arg2: i32) -> (i32, i32) {
    %c0_i32 = arith.constant 0 : i32
    return %arg0, %arg2 : i32, i32
  }
  func.func @transform_1(%arg0: i32, %arg1: i32, %arg2: i32) -> (i32, i32) {
    %c0_i32 = arith.constant 0 : i32
    return %arg2, %arg1 : i32, i32
  }
  func.func @transform_2(%arg0: i32, %arg1: i32, %arg2: i32) -> (i32, i32) {
    %c0_i32 = arith.constant 0 : i32
    return %arg0, %arg1 : i32, i32
  }
}

module attributes {stable_mosaic.version = 11 : i64} {
  func.func @_mm_acc_bias_relu_kernel(%arg0: i32, %arg1: i32, %arg2: i32, %arg3: memref<128x128xbf16, #tpu.memory_space<vmem>>, %arg4: memref<128x128xbf16, #tpu.memory_space<vmem>>, %arg5: memref<8x128xf32, #tpu.memory_space<vmem>>, %arg6: memref<128x128xbf16, #tpu.memory_space<vmem>>, %arg7: memref<128x128xf32, #tpu.memory_space<vmem>>) attributes {dimension_semantics = [#tpu.dimension_semantics<parallel>, #tpu.dimension_semantics<parallel>, #tpu.dimension_semantics<arbitrary>], iteration_bounds = array<i64: 1, 1, 1>, scalar_prefetch = 0 : i64, scratch_operands = 1 : i64, tpu.core_type = #tpu.core_type<tc>, window_params = [{transform_indices = @transform_0, window_bounds = array<i64: 128, 128>}, {transform_indices = @transform_1, window_bounds = array<i64: 128, 128>}, {transform_indices = @transform_2, window_bounds = array<i64: 8, 128>}, {transform_indices = @transform_3, window_bounds = array<i64: 128, 128>}]} {
    %c0_i32 = arith.constant 0 : i32
    %0 = arith.cmpi eq, %arg2, %c0_i32 : i32
    %1 = arith.extui %0 : i1 to i32
    %c0_i32_0 = arith.constant 0 : i32
    %2 = arith.cmpi ne, %1, %c0_i32_0 : i32
    scf.if %2 {
      %cst_10 = arith.constant 0.000000e+00 : f32
      %12 = vector.broadcast %cst_10 : f32 to vector<128x128xf32>
      %c0_11 = arith.constant 0 : index
      %c0_12 = arith.constant 0 : index
      %13 = vector.load %arg7[%c0_11, %c0_12] : memref<128x128xf32, #tpu.memory_space<vmem>>, vector<128x128xf32>
      tpu.vector_store %arg7[%c0_11, %c0_12], %12 {strides = array<i32>} : memref<128x128xf32, #tpu.memory_space<vmem>>, vector<128x128xf32>,
    } else {
    }
    %c0 = arith.constant 0 : index
    %c0_1 = arith.constant 0 : index
    %3 = vector.load %arg7[%c0, %c0_1] : memref<128x128xf32, #tpu.memory_space<vmem>>, vector<128x128xf32>
    %c0_2 = arith.constant 0 : index
    %c0_3 = arith.constant 0 : index
    %4 = vector.load %arg3[%c0_2, %c0_3] : memref<128x128xbf16, #tpu.memory_space<vmem>>, vector<128x128xbf16>
    %c0_4 = arith.constant 0 : index
    %c0_5 = arith.constant 0 : index
    %5 = vector.load %arg4[%c0_4, %c0_5] : memref<128x128xbf16, #tpu.memory_space<vmem>>, vector<128x128xbf16>
    %cst = arith.constant dense<0.000000e+00> : vector<128x128xf32>
    %6 = tpu.matmul %4, %5, %cst {dimension_numbers = #tpu.dot_dimension_numbers<[1], [0], [0], [1], [0, 0, 1, 1], [], []>} : vector<128x128xbf16>, vector<128x128xbf16>, vector<128x128xf32> -> vector<128x128xf32>
    %7 = arith.addf %3, %6 : vector<128x128xf32>
    %c0_6 = arith.constant 0 : index
    %c0_7 = arith.constant 0 : index
    %8 = vector.load %arg7[%c0_6, %c0_7] : memref<128x128xf32, #tpu.memory_space<vmem>>, vector<128x128xf32>
    tpu.vector_store %arg7[%c0_6, %c0_7], %7 {strides = array<i32>} : memref<128x128xf32, #tpu.memory_space<vmem>>, vector<128x128xf32>,
    %c0_i32_8 = arith.constant 0 : i32
    %9 = arith.cmpi eq, %arg2, %c0_i32_8 : i32
    %10 = arith.extui %9 : i1 to i32
    %c0_i32_9 = arith.constant 0 : i32
    %11 = arith.cmpi ne, %10, %c0_i32_9 : i32
    scf.if %11 {
      %c0_10 = arith.constant 0 : index
      %c0_11 = arith.constant 0 : index
      %12 = vector.load %arg5[%c0_10, %c0_11] : memref<8x128xf32, #tpu.memory_space<vmem>>, vector<8x128xf32>
      %13 = vector.extract_strided_slice %12 {offsets = [0, 0], sizes = [1, 128], strides = [1, 1]} : vector<8x128xf32> to vector<1x128xf32>
      %c0_12 = arith.constant 0 : index
      %c0_13 = arith.constant 0 : index
      %14 = vector.load %arg7[%c0_12, %c0_13] : memref<128x128xf32, #tpu.memory_space<vmem>>, vector<128x128xf32>
      %15 = vector.broadcast %13 : vector<1x128xf32> to vector<128x128xf32>
      %16 = arith.addf %14, %15 : vector<128x128xf32>
      %cst_14 = arith.constant 0.000000e+00 : f32
      %17 = vector.broadcast %cst_14 : f32 to vector<128x128xf32>
      %18 = arith.maximumf %16, %17 : vector<128x128xf32>
      %19 = arith.truncf %18 : vector<128x128xf32> to vector<128x128xbf16>
      %c0_15 = arith.constant 0 : index
      %c0_16 = arith.constant 0 : index
      %20 = vector.load %arg6[%c0_15, %c0_16] : memref<128x128xbf16, #tpu.memory_space<vmem>>, vector<128x128xbf16>
      tpu.vector_store %arg6[%c0_15, %c0_16], %19 {strides = array<i32>} : memref<128x128xbf16, #tpu.memory_space<vmem>>, vector<128x128xbf16>,
    } else {
    }
    return
  }
  func.func @transform_0(%arg0: i32, %arg1: i32, %arg2: i32) -> (i32, i32) {
    %c0_i32 = arith.constant 0 : i32
    return %arg0, %arg2 : i32, i32
  }
  func.func @transform_1(%arg0: i32, %arg1: i32, %arg2: i32) -> (i32, i32) {
    %c0_i32 = arith.constant 0 : i32
    return %arg2, %arg1 : i32, i32
  }
  func.func @transform_2(%arg0: i32, %arg1: i32, %arg2: i32) -> (i32, i32) {
    %c0_i32 = arith.constant 0 : i32
    %c0_i32_0 = arith.constant 0 : i32
    return %c0_i32, %arg1 : i32, i32
  }
  func.func @transform_3(%arg0: i32, %arg1: i32, %arg2: i32) -> (i32, i32) {
    %c0_i32 = arith.constant 0 : i32
    return %arg0, %arg1 : i32, i32
  }
}

module attributes {stable_mosaic.version = 11 : i64} {
  func.func @_mm_acc_kernel(%arg0: i32, %arg1: i32, %arg2: i32, %arg3: memref<128x128xbf16, #tpu.memory_space<vmem>>, %arg4: memref<128x128xbf16, #tpu.memory_space<vmem>>, %arg5: memref<128x128xbf16, #tpu.memory_space<vmem>>, %arg6: memref<128x128xf32, #tpu.memory_space<vmem>>) attributes {dimension_semantics = [#tpu.dimension_semantics<parallel>, #tpu.dimension_semantics<parallel>, #tpu.dimension_semantics<arbitrary>], iteration_bounds = array<i64: 1, 1, 1>, scalar_prefetch = 0 : i64, scratch_operands = 1 : i64, tpu.core_type = #tpu.core_type<tc>, window_params = [{transform_indices = @transform_0, window_bounds = array<i64: 128, 128>}, {transform_indices = @transform_1, window_bounds = array<i64: 128, 128>}, {transform_indices = @transform_2, window_bounds = array<i64: 128, 128>}]} {
    %c0_i32 = arith.constant 0 : i32
    %0 = arith.cmpi eq, %arg2, %c0_i32 : i32
    %1 = arith.extui %0 : i1 to i32
    %c0_i32_0 = arith.constant 0 : i32
    %2 = arith.cmpi ne, %1, %c0_i32_0 : i32
    scf.if %2 {
      %cst_10 = arith.constant 0.000000e+00 : f32
      %12 = vector.broadcast %cst_10 : f32 to vector<128x128xf32>
      %c0_11 = arith.constant 0 : index
      %c0_12 = arith.constant 0 : index
      %13 = vector.load %arg6[%c0_11, %c0_12] : memref<128x128xf32, #tpu.memory_space<vmem>>, vector<128x128xf32>
      tpu.vector_store %arg6[%c0_11, %c0_12], %12 {strides = array<i32>} : memref<128x128xf32, #tpu.memory_space<vmem>>, vector<128x128xf32>,
    } else {
    }
    %c0 = arith.constant 0 : index
    %c0_1 = arith.constant 0 : index
    %3 = vector.load %arg6[%c0, %c0_1] : memref<128x128xf32, #tpu.memory_space<vmem>>, vector<128x128xf32>
    %c0_2 = arith.constant 0 : index
    %c0_3 = arith.constant 0 : index
    %4 = vector.load %arg3[%c0_2, %c0_3] : memref<128x128xbf16, #tpu.memory_space<vmem>>, vector<128x128xbf16>
    %c0_4 = arith.constant 0 : index
    %c0_5 = arith.constant 0 : index
    %5 = vector.load %arg4[%c0_4, %c0_5] : memref<128x128xbf16, #tpu.memory_space<vmem>>, vector<128x128xbf16>
    %cst = arith.constant dense<0.000000e+00> : vector<128x128xf32>
    %6 = tpu.matmul %4, %5, %cst {dimension_numbers = #tpu.dot_dimension_numbers<[1], [0], [0], [1], [0, 0, 1, 1], [], []>} : vector<128x128xbf16>, vector<128x128xbf16>, vector<128x128xf32> -> vector<128x128xf32>
    %7 = arith.addf %3, %6 : vector<128x128xf32>
    %c0_6 = arith.constant 0 : index
    %c0_7 = arith.constant 0 : index
    %8 = vector.load %arg6[%c0_6, %c0_7] : memref<128x128xf32, #tpu.memory_space<vmem>>, vector<128x128xf32>
    tpu.vector_store %arg6[%c0_6, %c0_7], %7 {strides = array<i32>} : memref<128x128xf32, #tpu.memory_space<vmem>>, vector<128x128xf32>,
    %c0_i32_8 = arith.constant 0 : i32
    %9 = arith.cmpi eq, %arg2, %c0_i32_8 : i32
    %10 = arith.extui %9 : i1 to i32
    %c0_i32_9 = arith.constant 0 : i32
    %11 = arith.cmpi ne, %10, %c0_i32_9 : i32
    scf.if %11 {
      %c0_10 = arith.constant 0 : index
      %c0_11 = arith.constant 0 : index
      %12 = vector.load %arg6[%c0_10, %c0_11] : memref<128x128xf32, #tpu.memory_space<vmem>>, vector<128x128xf32>
      %13 = arith.truncf %12 : vector<128x128xf32> to vector<128x128xbf16>
      %c0_12 = arith.constant 0 : index
      %c0_13 = arith.constant 0 : index
      %14 = vector.load %arg5[%c0_12, %c0_13] : memref<128x128xbf16, #tpu.memory_space<vmem>>, vector<128x128xbf16>
      tpu.vector_store %arg5[%c0_12, %c0_13], %13 {strides = array<i32>} : memref<128x128xbf16, #tpu.memory_space<vmem>>, vector<128x128xbf16>,
    } else {
    }
    return
  }
  func.func @transform_0(%arg0: i32, %arg1: i32, %arg2: i32) -> (i32, i32) {
    %c0_i32 = arith.constant 0 : i32
    return %arg0, %arg2 : i32, i32
  }
  func.func @transform_1(%arg0: i32, %arg1: i32, %arg2: i32) -> (i32, i32) {
    %c0_i32 = arith.constant 0 : i32
    return %arg2, %arg1 : i32, i32
  }
  func.func @transform_2(%arg0: i32, %arg1: i32, %arg2: i32) -> (i32, i32) {
    %c0_i32 = arith.constant 0 : i32
    return %arg0, %arg1 : i32, i32
  }
}

module attributes {stable_mosaic.version = 11 : i64} {
  func.func @_mm_f32_bias_relu_kernel(%arg0: i32, %arg1: i32, %arg2: i32, %arg3: memref<128x128xbf16, #tpu.memory_space<vmem>>, %arg4: memref<128x128xbf16, #tpu.memory_space<vmem>>, %arg5: memref<8x128xf32, #tpu.memory_space<vmem>>, %arg6: memref<128x128xf32, #tpu.memory_space<vmem>>) attributes {dimension_semantics = [#tpu.dimension_semantics<parallel>, #tpu.dimension_semantics<parallel>, #tpu.dimension_semantics<arbitrary>], iteration_bounds = array<i64: 1, 1, 1>, scalar_prefetch = 0 : i64, scratch_operands = 0 : i64, tpu.core_type = #tpu.core_type<tc>, window_params = [{transform_indices = @transform_0, window_bounds = array<i64: 128, 128>}, {transform_indices = @transform_1, window_bounds = array<i64: 128, 128>}, {transform_indices = @transform_2, window_bounds = array<i64: 8, 128>}, {transform_indices = @transform_3, window_bounds = array<i64: 128, 128>}]} {
    %c0_i32 = arith.constant 0 : i32
    %0 = arith.cmpi eq, %arg2, %c0_i32 : i32
    %1 = arith.extui %0 : i1 to i32
    %c0_i32_0 = arith.constant 0 : i32
    %2 = arith.cmpi ne, %1, %c0_i32_0 : i32
    scf.if %2 {
      %cst_10 = arith.constant 0.000000e+00 : f32
      %12 = vector.broadcast %cst_10 : f32 to vector<128x128xf32>
      %c0_11 = arith.constant 0 : index
      %c0_12 = arith.constant 0 : index
      %13 = vector.load %arg6[%c0_11, %c0_12] : memref<128x128xf32, #tpu.memory_space<vmem>>, vector<128x128xf32>
      tpu.vector_store %arg6[%c0_11, %c0_12], %12 {strides = array<i32>} : memref<128x128xf32, #tpu.memory_space<vmem>>, vector<128x128xf32>,
    } else {
    }
    %c0 = arith.constant 0 : index
    %c0_1 = arith.constant 0 : index
    %3 = vector.load %arg6[%c0, %c0_1] : memref<128x128xf32, #tpu.memory_space<vmem>>, vector<128x128xf32>
    %c0_2 = arith.constant 0 : index
    %c0_3 = arith.constant 0 : index
    %4 = vector.load %arg3[%c0_2, %c0_3] : memref<128x128xbf16, #tpu.memory_space<vmem>>, vector<128x128xbf16>
    %c0_4 = arith.constant 0 : index
    %c0_5 = arith.constant 0 : index
    %5 = vector.load %arg4[%c0_4, %c0_5] : memref<128x128xbf16, #tpu.memory_space<vmem>>, vector<128x128xbf16>
    %cst = arith.constant dense<0.000000e+00> : vector<128x128xf32>
    %6 = tpu.matmul %4, %5, %cst {dimension_numbers = #tpu.dot_dimension_numbers<[1], [0], [0], [1], [0, 0, 1, 1], [], []>} : vector<128x128xbf16>, vector<128x128xbf16>, vector<128x128xf32> -> vector<128x128xf32>
    %7 = arith.addf %3, %6 : vector<128x128xf32>
    %c0_6 = arith.constant 0 : index
    %c0_7 = arith.constant 0 : index
    %8 = vector.load %arg6[%c0_6, %c0_7] : memref<128x128xf32, #tpu.memory_space<vmem>>, vector<128x128xf32>
    tpu.vector_store %arg6[%c0_6, %c0_7], %7 {strides = array<i32>} : memref<128x128xf32, #tpu.memory_space<vmem>>, vector<128x128xf32>,
    %c0_i32_8 = arith.constant 0 : i32
    %9 = arith.cmpi eq, %arg2, %c0_i32_8 : i32
    %10 = arith.extui %9 : i1 to i32
    %c0_i32_9 = arith.constant 0 : i32
    %11 = arith.cmpi ne, %10, %c0_i32_9 : i32
    scf.if %11 {
      %c0_10 = arith.constant 0 : index
      %c0_11 = arith.constant 0 : index
      %12 = vector.load %arg5[%c0_10, %c0_11] : memref<8x128xf32, #tpu.memory_space<vmem>>, vector<8x128xf32>
      %13 = vector.extract_strided_slice %12 {offsets = [0, 0], sizes = [1, 128], strides = [1, 1]} : vector<8x128xf32> to vector<1x128xf32>
      %c0_12 = arith.constant 0 : index
      %c0_13 = arith.constant 0 : index
      %14 = vector.load %arg6[%c0_12, %c0_13] : memref<128x128xf32, #tpu.memory_space<vmem>>, vector<128x128xf32>
      %15 = vector.broadcast %13 : vector<1x128xf32> to vector<128x128xf32>
      %16 = arith.addf %14, %15 : vector<128x128xf32>
      %cst_14 = arith.constant 0.000000e+00 : f32
      %17 = vector.broadcast %cst_14 : f32 to vector<128x128xf32>
      %18 = arith.maximumf %16, %17 : vector<128x128xf32>
      %c0_15 = arith.constant 0 : index
      %c0_16 = arith.constant 0 : index
      %19 = vector.load %arg6[%c0_15, %c0_16] : memref<128x128xf32, #tpu.memory_space<vmem>>, vector<128x128xf32>
      tpu.vector_store %arg6[%c0_15, %c0_16], %18 {strides = array<i32>} : memref<128x128xf32, #tpu.memory_space<vmem>>, vector<128x128xf32>,
    } else {
    }
    return
  }
  func.func @transform_0(%arg0: i32, %arg1: i32, %arg2: i32) -> (i32, i32) {
    %c0_i32 = arith.constant 0 : i32
    return %arg0, %arg2 : i32, i32
  }
  func.func @transform_1(%arg0: i32, %arg1: i32, %arg2: i32) -> (i32, i32) {
    %c0_i32 = arith.constant 0 : i32
    return %arg2, %arg1 : i32, i32
  }
  func.func @transform_2(%arg0: i32, %arg1: i32, %arg2: i32) -> (i32, i32) {
    %c0_i32 = arith.constant 0 : i32
    %c0_i32_0 = arith.constant 0 : i32
    return %c0_i32, %arg1 : i32, i32
  }
  func.func @transform_3(%arg0: i32, %arg1: i32, %arg2: i32) -> (i32, i32) {
    %c0_i32 = arith.constant 0 : i32
    return %arg0, %arg1 : i32, i32
  }
}

module attributes {stable_mosaic.version = 11 : i64} {
  func.func @_mm_acc_bias_relu_kernel(%arg0: i32, %arg1: i32, %arg2: i32, %arg3: memref<128x128xbf16, #tpu.memory_space<vmem>>, %arg4: memref<128x256xbf16, #tpu.memory_space<vmem>>, %arg5: memref<8x256xf32, #tpu.memory_space<vmem>>, %arg6: memref<128x256xbf16, #tpu.memory_space<vmem>>, %arg7: memref<128x256xf32, #tpu.memory_space<vmem>>) attributes {dimension_semantics = [#tpu.dimension_semantics<parallel>, #tpu.dimension_semantics<parallel>, #tpu.dimension_semantics<arbitrary>], iteration_bounds = array<i64: 1, 1, 1>, scalar_prefetch = 0 : i64, scratch_operands = 1 : i64, tpu.core_type = #tpu.core_type<tc>, window_params = [{transform_indices = @transform_0, window_bounds = array<i64: 128, 128>}, {transform_indices = @transform_1, window_bounds = array<i64: 128, 256>}, {transform_indices = @transform_2, window_bounds = array<i64: 8, 256>}, {transform_indices = @transform_3, window_bounds = array<i64: 128, 256>}]} {
    %c0_i32 = arith.constant 0 : i32
    %0 = arith.cmpi eq, %arg2, %c0_i32 : i32
    %1 = arith.extui %0 : i1 to i32
    %c0_i32_0 = arith.constant 0 : i32
    %2 = arith.cmpi ne, %1, %c0_i32_0 : i32
    scf.if %2 {
      %cst_10 = arith.constant 0.000000e+00 : f32
      %12 = vector.broadcast %cst_10 : f32 to vector<128x256xf32>
      %c0_11 = arith.constant 0 : index
      %c0_12 = arith.constant 0 : index
      %13 = vector.load %arg7[%c0_11, %c0_12] : memref<128x256xf32, #tpu.memory_space<vmem>>, vector<128x256xf32>
      tpu.vector_store %arg7[%c0_11, %c0_12], %12 {strides = array<i32>} : memref<128x256xf32, #tpu.memory_space<vmem>>, vector<128x256xf32>,
    } else {
    }
    %c0 = arith.constant 0 : index
    %c0_1 = arith.constant 0 : index
    %3 = vector.load %arg7[%c0, %c0_1] : memref<128x256xf32, #tpu.memory_space<vmem>>, vector<128x256xf32>
    %c0_2 = arith.constant 0 : index
    %c0_3 = arith.constant 0 : index
    %4 = vector.load %arg3[%c0_2, %c0_3] : memref<128x128xbf16, #tpu.memory_space<vmem>>, vector<128x128xbf16>
    %c0_4 = arith.constant 0 : index
    %c0_5 = arith.constant 0 : index
    %5 = vector.load %arg4[%c0_4, %c0_5] : memref<128x256xbf16, #tpu.memory_space<vmem>>, vector<128x256xbf16>
    %cst = arith.constant dense<0.000000e+00> : vector<128x256xf32>
    %6 = tpu.matmul %4, %5, %cst {dimension_numbers = #tpu.dot_dimension_numbers<[1], [0], [0], [1], [0, 0, 1, 1], [], []>} : vector<128x128xbf16>, vector<128x256xbf16>, vector<128x256xf32> -> vector<128x256xf32>
    %7 = arith.addf %3, %6 : vector<128x256xf32>
    %c0_6 = arith.constant 0 : index
    %c0_7 = arith.constant 0 : index
    %8 = vector.load %arg7[%c0_6, %c0_7] : memref<128x256xf32, #tpu.memory_space<vmem>>, vector<128x256xf32>
    tpu.vector_store %arg7[%c0_6, %c0_7], %7 {strides = array<i32>} : memref<128x256xf32, #tpu.memory_space<vmem>>, vector<128x256xf32>,
    %c0_i32_8 = arith.constant 0 : i32
    %9 = arith.cmpi eq, %arg2, %c0_i32_8 : i32
    %10 = arith.extui %9 : i1 to i32
    %c0_i32_9 = arith.constant 0 : i32
    %11 = arith.cmpi ne, %10, %c0_i32_9 : i32
    scf.if %11 {
      %c0_10 = arith.constant 0 : index
      %c0_11 = arith.constant 0 : index
      %12 = vector.load %arg5[%c0_10, %c0_11] : memref<8x256xf32, #tpu.memory_space<vmem>>, vector<8x256xf32>
      %13 = vector.extract_strided_slice %12 {offsets = [0, 0], sizes = [1, 256], strides = [1, 1]} : vector<8x256xf32> to vector<1x256xf32>
      %c0_12 = arith.constant 0 : index
      %c0_13 = arith.constant 0 : index
      %14 = vector.load %arg7[%c0_12, %c0_13] : memref<128x256xf32, #tpu.memory_space<vmem>>, vector<128x256xf32>
      %15 = vector.broadcast %13 : vector<1x256xf32> to vector<128x256xf32>
      %16 = arith.addf %14, %15 : vector<128x256xf32>
      %cst_14 = arith.constant 0.000000e+00 : f32
      %17 = vector.broadcast %cst_14 : f32 to vector<128x256xf32>
      %18 = arith.maximumf %16, %17 : vector<128x256xf32>
      %19 = arith.truncf %18 : vector<128x256xf32> to vector<128x256xbf16>
      %c0_15 = arith.constant 0 : index
      %c0_16 = arith.constant 0 : index
      %20 = vector.load %arg6[%c0_15, %c0_16] : memref<128x256xbf16, #tpu.memory_space<vmem>>, vector<128x256xbf16>
      tpu.vector_store %arg6[%c0_15, %c0_16], %19 {strides = array<i32>} : memref<128x256xbf16, #tpu.memory_space<vmem>>, vector<128x256xbf16>,
    } else {
    }
    return
  }
  func.func @transform_0(%arg0: i32, %arg1: i32, %arg2: i32) -> (i32, i32) {
    %c0_i32 = arith.constant 0 : i32
    return %arg0, %arg2 : i32, i32
  }
  func.func @transform_1(%arg0: i32, %arg1: i32, %arg2: i32) -> (i32, i32) {
    %c0_i32 = arith.constant 0 : i32
    return %arg2, %arg1 : i32, i32
  }
  func.func @transform_2(%arg0: i32, %arg1: i32, %arg2: i32) -> (i32, i32) {
    %c0_i32 = arith.constant 0 : i32
    %c0_i32_0 = arith.constant 0 : i32
    return %c0_i32, %arg1 : i32, i32
  }
  func.func @transform_3(%arg0: i32, %arg1: i32, %arg2: i32) -> (i32, i32) {
    %c0_i32 = arith.constant 0 : i32
    return %arg0, %arg1 : i32, i32
  }
}

module attributes {stable_mosaic.version = 11 : i64} {
  func.func @_mm_f32_bias_relu_kernel(%arg0: i32, %arg1: i32, %arg2: i32, %arg3: memref<128x128xbf16, #tpu.memory_space<vmem>>, %arg4: memref<128x256xbf16, #tpu.memory_space<vmem>>, %arg5: memref<8x256xf32, #tpu.memory_space<vmem>>, %arg6: memref<128x256xf32, #tpu.memory_space<vmem>>) attributes {dimension_semantics = [#tpu.dimension_semantics<parallel>, #tpu.dimension_semantics<parallel>, #tpu.dimension_semantics<arbitrary>], iteration_bounds = array<i64: 1, 1, 1>, scalar_prefetch = 0 : i64, scratch_operands = 0 : i64, tpu.core_type = #tpu.core_type<tc>, window_params = [{transform_indices = @transform_0, window_bounds = array<i64: 128, 128>}, {transform_indices = @transform_1, window_bounds = array<i64: 128, 256>}, {transform_indices = @transform_2, window_bounds = array<i64: 8, 256>}, {transform_indices = @transform_3, window_bounds = array<i64: 128, 256>}]} {
    %c0_i32 = arith.constant 0 : i32
    %0 = arith.cmpi eq, %arg2, %c0_i32 : i32
    %1 = arith.extui %0 : i1 to i32
    %c0_i32_0 = arith.constant 0 : i32
    %2 = arith.cmpi ne, %1, %c0_i32_0 : i32
    scf.if %2 {
      %cst_10 = arith.constant 0.000000e+00 : f32
      %12 = vector.broadcast %cst_10 : f32 to vector<128x256xf32>
      %c0_11 = arith.constant 0 : index
      %c0_12 = arith.constant 0 : index
      %13 = vector.load %arg6[%c0_11, %c0_12] : memref<128x256xf32, #tpu.memory_space<vmem>>, vector<128x256xf32>
      tpu.vector_store %arg6[%c0_11, %c0_12], %12 {strides = array<i32>} : memref<128x256xf32, #tpu.memory_space<vmem>>, vector<128x256xf32>,
    } else {
    }
    %c0 = arith.constant 0 : index
    %c0_1 = arith.constant 0 : index
    %3 = vector.load %arg6[%c0, %c0_1] : memref<128x256xf32, #tpu.memory_space<vmem>>, vector<128x256xf32>
    %c0_2 = arith.constant 0 : index
    %c0_3 = arith.constant 0 : index
    %4 = vector.load %arg3[%c0_2, %c0_3] : memref<128x128xbf16, #tpu.memory_space<vmem>>, vector<128x128xbf16>
    %c0_4 = arith.constant 0 : index
    %c0_5 = arith.constant 0 : index
    %5 = vector.load %arg4[%c0_4, %c0_5] : memref<128x256xbf16, #tpu.memory_space<vmem>>, vector<128x256xbf16>
    %cst = arith.constant dense<0.000000e+00> : vector<128x256xf32>
    %6 = tpu.matmul %4, %5, %cst {dimension_numbers = #tpu.dot_dimension_numbers<[1], [0], [0], [1], [0, 0, 1, 1], [], []>} : vector<128x128xbf16>, vector<128x256xbf16>, vector<128x256xf32> -> vector<128x256xf32>
    %7 = arith.addf %3, %6 : vector<128x256xf32>
    %c0_6 = arith.constant 0 : index
    %c0_7 = arith.constant 0 : index
    %8 = vector.load %arg6[%c0_6, %c0_7] : memref<128x256xf32, #tpu.memory_space<vmem>>, vector<128x256xf32>
    tpu.vector_store %arg6[%c0_6, %c0_7], %7 {strides = array<i32>} : memref<128x256xf32, #tpu.memory_space<vmem>>, vector<128x256xf32>,
    %c0_i32_8 = arith.constant 0 : i32
    %9 = arith.cmpi eq, %arg2, %c0_i32_8 : i32
    %10 = arith.extui %9 : i1 to i32
    %c0_i32_9 = arith.constant 0 : i32
    %11 = arith.cmpi ne, %10, %c0_i32_9 : i32
    scf.if %11 {
      %c0_10 = arith.constant 0 : index
      %c0_11 = arith.constant 0 : index
      %12 = vector.load %arg5[%c0_10, %c0_11] : memref<8x256xf32, #tpu.memory_space<vmem>>, vector<8x256xf32>
      %13 = vector.extract_strided_slice %12 {offsets = [0, 0], sizes = [1, 256], strides = [1, 1]} : vector<8x256xf32> to vector<1x256xf32>
      %c0_12 = arith.constant 0 : index
      %c0_13 = arith.constant 0 : index
      %14 = vector.load %arg6[%c0_12, %c0_13] : memref<128x256xf32, #tpu.memory_space<vmem>>, vector<128x256xf32>
      %15 = vector.broadcast %13 : vector<1x256xf32> to vector<128x256xf32>
      %16 = arith.addf %14, %15 : vector<128x256xf32>
      %cst_14 = arith.constant 0.000000e+00 : f32
      %17 = vector.broadcast %cst_14 : f32 to vector<128x256xf32>
      %18 = arith.maximumf %16, %17 : vector<128x256xf32>
      %c0_15 = arith.constant 0 : index
      %c0_16 = arith.constant 0 : index
      %19 = vector.load %arg6[%c0_15, %c0_16] : memref<128x256xf32, #tpu.memory_space<vmem>>, vector<128x256xf32>
      tpu.vector_store %arg6[%c0_15, %c0_16], %18 {strides = array<i32>} : memref<128x256xf32, #tpu.memory_space<vmem>>, vector<128x256xf32>,
    } else {
    }
    return
  }
  func.func @transform_0(%arg0: i32, %arg1: i32, %arg2: i32) -> (i32, i32) {
    %c0_i32 = arith.constant 0 : i32
    return %arg0, %arg2 : i32, i32
  }
  func.func @transform_1(%arg0: i32, %arg1: i32, %arg2: i32) -> (i32, i32) {
    %c0_i32 = arith.constant 0 : i32
    return %arg2, %arg1 : i32, i32
  }
  func.func @transform_2(%arg0: i32, %arg1: i32, %arg2: i32) -> (i32, i32) {
    %c0_i32 = arith.constant 0 : i32
    %c0_i32_0 = arith.constant 0 : i32
    return %c0_i32, %arg1 : i32, i32
  }
  func.func @transform_3(%arg0: i32, %arg1: i32, %arg2: i32) -> (i32, i32) {
    %c0_i32 = arith.constant 0 : i32
    return %arg0, %arg1 : i32, i32
  }
}

module attributes {stable_mosaic.version = 11 : i64} {
  func.func @_mm_acc_kernel(%arg0: i32, %arg1: i32, %arg2: i32, %arg3: memref<128x256xbf16, #tpu.memory_space<vmem>>, %arg4: memref<256x256xbf16, #tpu.memory_space<vmem>>, %arg5: memref<128x256xbf16, #tpu.memory_space<vmem>>, %arg6: memref<128x256xf32, #tpu.memory_space<vmem>>) attributes {dimension_semantics = [#tpu.dimension_semantics<parallel>, #tpu.dimension_semantics<parallel>, #tpu.dimension_semantics<arbitrary>], iteration_bounds = array<i64: 1, 1, 1>, scalar_prefetch = 0 : i64, scratch_operands = 1 : i64, tpu.core_type = #tpu.core_type<tc>, window_params = [{transform_indices = @transform_0, window_bounds = array<i64: 128, 256>}, {transform_indices = @transform_1, window_bounds = array<i64: 256, 256>}, {transform_indices = @transform_2, window_bounds = array<i64: 128, 256>}]} {
    %c0_i32 = arith.constant 0 : i32
    %0 = arith.cmpi eq, %arg2, %c0_i32 : i32
    %1 = arith.extui %0 : i1 to i32
    %c0_i32_0 = arith.constant 0 : i32
    %2 = arith.cmpi ne, %1, %c0_i32_0 : i32
    scf.if %2 {
      %cst_10 = arith.constant 0.000000e+00 : f32
      %12 = vector.broadcast %cst_10 : f32 to vector<128x256xf32>
      %c0_11 = arith.constant 0 : index
      %c0_12 = arith.constant 0 : index
      %13 = vector.load %arg6[%c0_11, %c0_12] : memref<128x256xf32, #tpu.memory_space<vmem>>, vector<128x256xf32>
      tpu.vector_store %arg6[%c0_11, %c0_12], %12 {strides = array<i32>} : memref<128x256xf32, #tpu.memory_space<vmem>>, vector<128x256xf32>,
    } else {
    }
    %c0 = arith.constant 0 : index
    %c0_1 = arith.constant 0 : index
    %3 = vector.load %arg6[%c0, %c0_1] : memref<128x256xf32, #tpu.memory_space<vmem>>, vector<128x256xf32>
    %c0_2 = arith.constant 0 : index
    %c0_3 = arith.constant 0 : index
    %4 = vector.load %arg3[%c0_2, %c0_3] : memref<128x256xbf16, #tpu.memory_space<vmem>>, vector<128x256xbf16>
    %c0_4 = arith.constant 0 : index
    %c0_5 = arith.constant 0 : index
    %5 = vector.load %arg4[%c0_4, %c0_5] : memref<256x256xbf16, #tpu.memory_space<vmem>>, vector<256x256xbf16>
    %cst = arith.constant dense<0.000000e+00> : vector<128x256xf32>
    %6 = tpu.matmul %4, %5, %cst {dimension_numbers = #tpu.dot_dimension_numbers<[1], [0], [0], [1], [0, 0, 1, 1], [], []>} : vector<128x256xbf16>, vector<256x256xbf16>, vector<128x256xf32> -> vector<128x256xf32>
    %7 = arith.addf %3, %6 : vector<128x256xf32>
    %c0_6 = arith.constant 0 : index
    %c0_7 = arith.constant 0 : index
    %8 = vector.load %arg6[%c0_6, %c0_7] : memref<128x256xf32, #tpu.memory_space<vmem>>, vector<128x256xf32>
    tpu.vector_store %arg6[%c0_6, %c0_7], %7 {strides = array<i32>} : memref<128x256xf32, #tpu.memory_space<vmem>>, vector<128x256xf32>,
    %c0_i32_8 = arith.constant 0 : i32
    %9 = arith.cmpi eq, %arg2, %c0_i32_8 : i32
    %10 = arith.extui %9 : i1 to i32
    %c0_i32_9 = arith.constant 0 : i32
    %11 = arith.cmpi ne, %10, %c0_i32_9 : i32
    scf.if %11 {
      %c0_10 = arith.constant 0 : index
      %c0_11 = arith.constant 0 : index
      %12 = vector.load %arg6[%c0_10, %c0_11] : memref<128x256xf32, #tpu.memory_space<vmem>>, vector<128x256xf32>
      %13 = arith.truncf %12 : vector<128x256xf32> to vector<128x256xbf16>
      %c0_12 = arith.constant 0 : index
      %c0_13 = arith.constant 0 : index
      %14 = vector.load %arg5[%c0_12, %c0_13] : memref<128x256xbf16, #tpu.memory_space<vmem>>, vector<128x256xbf16>
      tpu.vector_store %arg5[%c0_12, %c0_13], %13 {strides = array<i32>} : memref<128x256xbf16, #tpu.memory_space<vmem>>, vector<128x256xbf16>,
    } else {
    }
    return
  }
  func.func @transform_0(%arg0: i32, %arg1: i32, %arg2: i32) -> (i32, i32) {
    %c0_i32 = arith.constant 0 : i32
    return %arg0, %arg2 : i32, i32
  }
  func.func @transform_1(%arg0: i32, %arg1: i32, %arg2: i32) -> (i32, i32) {
    %c0_i32 = arith.constant 0 : i32
    return %arg2, %arg1 : i32, i32
  }
  func.func @transform_2(%arg0: i32, %arg1: i32, %arg2: i32) -> (i32, i32) {
    %c0_i32 = arith.constant 0 : i32
    return %arg0, %arg1 : i32, i32
  }
}

module attributes {stable_mosaic.version = 11 : i64} {
  func.func @_mm_f32_kernel(%arg0: i32, %arg1: i32, %arg2: i32, %arg3: memref<8x128xbf16, #tpu.memory_space<vmem>>, %arg4: memref<128x256xbf16, #tpu.memory_space<vmem>>, %arg5: memref<8x256xf32, #tpu.memory_space<vmem>>) attributes {dimension_semantics = [#tpu.dimension_semantics<parallel>, #tpu.dimension_semantics<parallel>, #tpu.dimension_semantics<arbitrary>], iteration_bounds = array<i64: 1, 1, 1>, scalar_prefetch = 0 : i64, scratch_operands = 0 : i64, tpu.core_type = #tpu.core_type<tc>, window_params = [{transform_indices = @transform_0, window_bounds = array<i64: 8, 128>}, {transform_indices = @transform_1, window_bounds = array<i64: 128, 256>}, {transform_indices = @transform_2, window_bounds = array<i64: 8, 256>}]} {
    %c0_i32 = arith.constant 0 : i32
    %0 = arith.cmpi eq, %arg2, %c0_i32 : i32
    %1 = arith.extui %0 : i1 to i32
    %c0_i32_0 = arith.constant 0 : i32
    %2 = arith.cmpi ne, %1, %c0_i32_0 : i32
    scf.if %2 {
      %cst_8 = arith.constant 0.000000e+00 : f32
      %9 = vector.broadcast %cst_8 : f32 to vector<8x256xf32>
      %c0_9 = arith.constant 0 : index
      %c0_10 = arith.constant 0 : index
      %10 = vector.load %arg5[%c0_9, %c0_10] : memref<8x256xf32, #tpu.memory_space<vmem>>, vector<8x256xf32>
      tpu.vector_store %arg5[%c0_9, %c0_10], %9 {strides = array<i32>} : memref<8x256xf32, #tpu.memory_space<vmem>>, vector<8x256xf32>,
    } else {
    }
    %c0 = arith.constant 0 : index
    %c0_1 = arith.constant 0 : index
    %3 = vector.load %arg5[%c0, %c0_1] : memref<8x256xf32, #tpu.memory_space<vmem>>, vector<8x256xf32>
    %c0_2 = arith.constant 0 : index
    %c0_3 = arith.constant 0 : index
    %4 = vector.load %arg3[%c0_2, %c0_3] : memref<8x128xbf16, #tpu.memory_space<vmem>>, vector<8x128xbf16>
    %c0_4 = arith.constant 0 : index
    %c0_5 = arith.constant 0 : index
    %5 = vector.load %arg4[%c0_4, %c0_5] : memref<128x256xbf16, #tpu.memory_space<vmem>>, vector<128x256xbf16>
    %cst = arith.constant dense<0.000000e+00> : vector<8x256xf32>
    %6 = tpu.matmul %4, %5, %cst {dimension_numbers = #tpu.dot_dimension_numbers<[1], [0], [0], [1], [0, 0, 1, 1], [], []>} : vector<8x128xbf16>, vector<128x256xbf16>, vector<8x256xf32> -> vector<8x256xf32>
    %7 = arith.addf %3, %6 : vector<8x256xf32>
    %c0_6 = arith.constant 0 : index
    %c0_7 = arith.constant 0 : index
    %8 = vector.load %arg5[%c0_6, %c0_7] : memref<8x256xf32, #tpu.memory_space<vmem>>, vector<8x256xf32>
    tpu.vector_store %arg5[%c0_6, %c0_7], %7 {strides = array<i32>} : memref<8x256xf32, #tpu.memory_space<vmem>>, vector<8x256xf32>,
    return
  }
  func.func @transform_0(%arg0: i32, %arg1: i32, %arg2: i32) -> (i32, i32) {
    %c0_i32 = arith.constant 0 : i32
    return %arg0, %arg2 : i32, i32
  }
  func.func @transform_1(%arg0: i32, %arg1: i32, %arg2: i32) -> (i32, i32) {
    %c0_i32 = arith.constant 0 : i32
    return %arg2, %arg1 : i32, i32
  }
  func.func @transform_2(%arg0: i32, %arg1: i32, %arg2: i32) -> (i32, i32) {
    %c0_i32 = arith.constant 0 : i32
    return %arg0, %arg1 : i32, i32
  }
}

module attributes {stable_mosaic.version = 11 : i64} {
  func.func @_mm_f32_kernel(%arg0: i32, %arg1: i32, %arg2: i32, %arg3: memref<8x128xbf16, #tpu.memory_space<vmem>>, %arg4: memref<128x128xbf16, #tpu.memory_space<vmem>>, %arg5: memref<8x128xf32, #tpu.memory_space<vmem>>) attributes {dimension_semantics = [#tpu.dimension_semantics<parallel>, #tpu.dimension_semantics<parallel>, #tpu.dimension_semantics<arbitrary>], iteration_bounds = array<i64: 1, 1, 1>, scalar_prefetch = 0 : i64, scratch_operands = 0 : i64, tpu.core_type = #tpu.core_type<tc>, window_params = [{transform_indices = @transform_0, window_bounds = array<i64: 8, 128>}, {transform_indices = @transform_1, window_bounds = array<i64: 128, 128>}, {transform_indices = @transform_2, window_bounds = array<i64: 8, 128>}]} {
    %c0_i32 = arith.constant 0 : i32
    %0 = arith.cmpi eq, %arg2, %c0_i32 : i32
    %1 = arith.extui %0 : i1 to i32
    %c0_i32_0 = arith.constant 0 : i32
    %2 = arith.cmpi ne, %1, %c0_i32_0 : i32
    scf.if %2 {
      %cst_8 = arith.constant 0.000000e+00 : f32
      %9 = vector.broadcast %cst_8 : f32 to vector<8x128xf32>
      %c0_9 = arith.constant 0 : index
      %c0_10 = arith.constant 0 : index
      %10 = vector.load %arg5[%c0_9, %c0_10] : memref<8x128xf32, #tpu.memory_space<vmem>>, vector<8x128xf32>
      tpu.vector_store %arg5[%c0_9, %c0_10], %9 {strides = array<i32>} : memref<8x128xf32, #tpu.memory_space<vmem>>, vector<8x128xf32>,
    } else {
    }
    %c0 = arith.constant 0 : index
    %c0_1 = arith.constant 0 : index
    %3 = vector.load %arg5[%c0, %c0_1] : memref<8x128xf32, #tpu.memory_space<vmem>>, vector<8x128xf32>
    %c0_2 = arith.constant 0 : index
    %c0_3 = arith.constant 0 : index
    %4 = vector.load %arg3[%c0_2, %c0_3] : memref<8x128xbf16, #tpu.memory_space<vmem>>, vector<8x128xbf16>
    %c0_4 = arith.constant 0 : index
    %c0_5 = arith.constant 0 : index
    %5 = vector.load %arg4[%c0_4, %c0_5] : memref<128x128xbf16, #tpu.memory_space<vmem>>, vector<128x128xbf16>
    %cst = arith.constant dense<0.000000e+00> : vector<8x128xf32>
    %6 = tpu.matmul %4, %5, %cst {dimension_numbers = #tpu.dot_dimension_numbers<[1], [0], [0], [1], [0, 0, 1, 1], [], []>} : vector<8x128xbf16>, vector<128x128xbf16>, vector<8x128xf32> -> vector<8x128xf32>
    %7 = arith.addf %3, %6 : vector<8x128xf32>
    %c0_6 = arith.constant 0 : index
    %c0_7 = arith.constant 0 : index
    %8 = vector.load %arg5[%c0_6, %c0_7] : memref<8x128xf32, #tpu.memory_space<vmem>>, vector<8x128xf32>
    tpu.vector_store %arg5[%c0_6, %c0_7], %7 {strides = array<i32>} : memref<8x128xf32, #tpu.memory_space<vmem>>, vector<8x128xf32>,
    return
  }
  func.func @transform_0(%arg0: i32, %arg1: i32, %arg2: i32) -> (i32, i32) {
    %c0_i32 = arith.constant 0 : i32
    return %arg0, %arg2 : i32, i32
  }
  func.func @transform_1(%arg0: i32, %arg1: i32, %arg2: i32) -> (i32, i32) {
    %c0_i32 = arith.constant 0 : i32
    return %arg2, %arg1 : i32, i32
  }
  func.func @transform_2(%arg0: i32, %arg1: i32, %arg2: i32) -> (i32, i32) {
    %c0_i32 = arith.constant 0 : i32
    return %arg0, %arg1 : i32, i32
  }
}

</mosaic_0001>

<bundles_post_ra>
// kernel: encoder_module_forward.11
= control target key start
LH: loop header
LB: loop body
LE: loop exit
PB: predicated region body
PF: predicated region fallthrough
CT: control target
= control target key end

     0   :  { %v328_v16 = vlaneseq  ;;  %s718_s1 = inlined_call_operand.vmem [shape: bf16[128,128], index: 1, kind: input, shape index: {}]   ;;  %s719_s0 = inlined_call_operand.vmem [shape: bf16[128,128], index: 0, kind: input, shape index: {}]   ;;  %s720_s2 = inlined_call_operand.vmem [shape: f32[8,128], index: 2, kind: input, shape index: {}]   ;;  %s721_s3 = inlined_call_operand.vmem [shape: bf16[128,128], index: 3, kind: output, shape index: {}]  }
   0x1   :  { %v607_v0 = vld [vmem:[%s718_s1] sm:$0xff]   ;;  %v608_v1 = vld [vmem:[%s718_s1 + $0x8] sm:$0xff]   ;;  %v609_v2 = vld [vmem:[%s718_s1 + $0x10] sm:$0xff]  }
   0x2   :  { %559 = vmatprep.subr.bf16.mxu0 %v607_v0  ;;  %591 = vmatprep.subr.bf16.mxu1 %v607_v0  ;;  %v610_v3 = vld [vmem:[%s718_s1 + $0x18] sm:$0xff]   ;;  %v615_v4 = vld [vmem:[%s719_s0] sm:$0xff]   ;;  %v612_v7 = vld [vmem:[%s718_s1 + $0x28] sm:$0xff]   ;;  %v329_v17 = vshrl.u32 %v328_v16, 7 }
   0x3   :  { %560 = vmatpush3.bf16.msra.mxu0 %v607_v0  ;;  %599 = vmatpush3.bf16.msra.mxu1 %v607_v0  ;;  %v616_v5 = vld [vmem:[%s719_s0 + $0x20] sm:$0xff]   ;;  %v613_v8 = vld [vmem:[%s718_s1 + $0x30] sm:$0xff]   ;;  %v614_v9 = vld [vmem:[%s718_s1 + $0x38] sm:$0xff]  }
   0x4   :  { %561 = vmatprep.subr.bf16.mxu0 %v608_v1  ;;  %592 = vmatprep.subr.bf16.mxu1 %v608_v1  ;;  %v611_v6 = vld [vmem:[%s718_s1 + $0x20] sm:$0xff]   ;;  %v617_v10 = vld [vmem:[%s719_s0 + $0x8] sm:$0xff]   ;;  %v619_v12 = vld [vmem:[%s719_s0 + $0x10] sm:$0xff]   ;;  %v330_v18 = vsub.s32 0, %v329_v17 }
   0x5   :  { %575 = vmatprep.mubr.bf16.mxu0 %v615_v4  ;;  %583 = vmatprep.mubr.bf16.mxu1 %v616_v5  ;;  %v618_v11 = vld [vmem:[%s719_s0 + $0x28] sm:$0xff]   ;;  %v620_v13 = vld [vmem:[%s719_s0 + $0x30] sm:$0xff]   ;;  %v621_v14 = vld [vmem:[%s719_s0 + $0x18] sm:$0xff]  }
   0x6   :  { %v622_v15 = vld [vmem:[%s719_s0 + $0x38] sm:$0xff]   ;;  %v311_v19 = vld [vmem:[%s720_s2] sm:$0xff] }
   0x7   :  { %562 = vmatpush3.bf16.msra.mxu0 %v608_v1  ;;  %600 = vmatpush3.bf16.msra.mxu1 %v608_v1  ;;  %v331_v20 = vrot.slane %v311_v19, %v330_v18 }
   0x8   :  { %563 = vmatprep.subr.bf16.mxu0 %v609_v2  ;;  %593 = vmatprep.subr.bf16.mxu1 %v609_v2 }
   0xb   :  { %564 = vmatpush3.bf16.msra.mxu0 %v609_v2  ;;  %601 = vmatpush3.bf16.msra.mxu1 %v609_v2 }
   0xc   :  { %565 = vmatprep.subr.bf16.mxu0 %v610_v3  ;;  %594 = vmatprep.subr.bf16.mxu1 %v610_v3 }
   0xf   :  { %566 = vmatpush3.bf16.msra.mxu0 %v610_v3  ;;  %602 = vmatpush3.bf16.msra.mxu1 %v610_v3 }
  0x10   :  { %567 = vmatprep.subr.bf16.mxu0 %v611_v6  ;;  %595 = vmatprep.subr.bf16.mxu1 %v611_v6 }
  0x13   :  { %568 = vmatpush3.bf16.msra.mxu0 %v611_v6  ;;  %603 = vmatpush3.bf16.msra.mxu1 %v611_v6 }
  0x14   :  { %569 = vmatprep.subr.bf16.mxu0 %v612_v7  ;;  %596 = vmatprep.subr.bf16.mxu1 %v612_v7 }
  0x17   :  { %570 = vmatpush3.bf16.msra.mxu0 %v612_v7  ;;  %604 = vmatpush3.bf16.msra.mxu1 %v612_v7 }
  0x18   :  { %571 = vmatprep.subr.bf16.mxu0 %v613_v8  ;;  %597 = vmatprep.subr.bf16.mxu1 %v613_v8 }
  0x1b   :  { %572 = vmatpush3.bf16.msra.mxu0 %v613_v8  ;;  %605 = vmatpush3.bf16.msra.mxu1 %v613_v8 }
  0x1c   :  { %573 = vmatprep.subr.bf16.mxu0 %v614_v9  ;;  %598 = vmatprep.subr.bf16.mxu1 %v614_v9 }
  0x1f   :  { %574 = vmatpush3.bf16.msra.mxu0 %v614_v9  ;;  %606 = vmatpush3.bf16.msra.mxu1 %v614_v9 }
  0x22   :  { %576 = vmatmul.mubr.bf16.vlgmr.msra.gmra.mrb[0].mxu0 %v617_v10  ;;  %584 = vmatmul.mubr.bf16.vlgmr.msra.gmra.mrb[0].mxu1 %v618_v11 }
  0x23   :  { %579 = vmatprep.mubr.bf16.mxu0 %v619_v12  ;;  %587 = vmatprep.mubr.bf16.mxu1 %v620_v13 }
  0x2a   :  { %580 = vmatmul.mubr.bf16.gmra.mrb[4].mxu0 %v621_v14  ;;  %588 = vmatmul.mubr.bf16.gmra.mrb[4].mxu1 %v622_v15 }
  0xf5   :  { %v577_v21 = vpop.f32.mrb[0].mxu0  ;;  %v585_v22 = vpop.f32.mrb[0].mxu1 }
  0xf6   :  { %v334_v23 = vadd.f32 %v577_v21, %v331_v20  ;;  %v342_v24 = vadd.f32 %v585_v22, %v331_v20  ;;  %v213_v25 = vpop.f32.mrb[1].mxu0  ;;  %v245_v26 = vpop.f32.mrb[1].mxu1 }
  0xf7   :  { %v332_v27 = vadd.f32 %v331_v20, %v213_v25  ;;  %v340_v28 = vadd.f32 %v331_v20, %v245_v26  ;;  %v578_v29 = vpop.f32.mrb[2].mxu0  ;;  %v586_v30 = vpop.f32.mrb[2].mxu1 }
  0xf8   :  { %v335_v31 = vadd.f32 %v578_v29, %v331_v20  ;;  %v343_v32 = vadd.f32 %v586_v30, %v331_v20  ;;  %v216_v33 = vpop.f32.mrb[3].mxu0  ;;  %v248_v34 = vpop.f32.mrb[3].mxu1  ;;  %v350_v37 = vmax.f32 %v334_v23, 0.0  ;;  %v358_v38 = vmax.f32 %v342_v24, 0.0 }
  0xf9   :  { %v333_v35 = vadd.f32 %v331_v20, %v216_v33  ;;  %v341_v36 = vadd.f32 %v331_v20, %v248_v34  ;;  %v348_v41 = vmax.f32 %v332_v27, 0.0  ;;  %v356_v42 = vmax.f32 %v340_v28, 0.0 }
  0xfa   :  { %v351_v39 = vmax.f32 %v335_v31, 0.0  ;;  %v359_v40 = vmax.f32 %v343_v32, 0.0 }
  0xfb   :  { %v349_v43 = vmax.f32 %v333_v35, 0.0  ;;  %v357_v44 = vmax.f32 %v341_v36, 0.0 }
  0xfc   :  { %v504_v45 = vpack.c.bf16 %v351_v39, %v350_v37  ;;  %v524_v46 = vpack.c.bf16 %v359_v40, %v358_v38 }
  0xfd   :  { %v499_v47 = vpack.c.bf16 %v349_v43, %v348_v41  ;;  %v519_v48 = vpack.c.bf16 %v357_v44, %v356_v42  ;;  %v581_v49 = vpop.f32.mrb[4].mxu0  ;;  %v589_v50 = vpop.f32.mrb[4].mxu1 }
  0xfe   :  { %536 = vst [vmem:[%s721_s3 + $0x8] sm:$0xff] %v504_v45   ;;  %540 = vst [vmem:[%s721_s3 + $0x28] sm:$0xff] %v524_v46   ;;  %v338_v51 = vadd.f32 %v581_v49, %v331_v20  ;;  %v346_v52 = vadd.f32 %v589_v50, %v331_v20  ;;  %v229_v53 = vpop.f32.mrb[5].mxu0  ;;  %v261_v54 = vpop.f32.mrb[5].mxu1 }
  0xff   :  { %500 = vst [vmem:[%s721_s3] sm:$0xff] %v499_v47   ;;  %539 = vst [vmem:[%s721_s3 + $0x20] sm:$0xff] %v519_v48   ;;  %v336_v55 = vadd.f32 %v331_v20, %v229_v53  ;;  %v344_v56 = vadd.f32 %v331_v20, %v261_v54  ;;  %v582_v57 = vpop.f32.mrb[6].mxu0  ;;  %v590_v58 = vpop.f32.mrb[6].mxu1 }
 0x100   :  { %v339_v59 = vadd.f32 %v582_v57, %v331_v20  ;;  %v347_v60 = vadd.f32 %v590_v58, %v331_v20  ;;  %v232_v61 = vpop.f32.mrb[7].mxu0  ;;  %v264_v62 = vpop.f32.mrb[7].mxu1  ;;  %v354_v1 = vmax.f32 %v338_v51, 0.0  ;;  %v362_v2 = vmax.f32 %v346_v52, 0.0 }
 0x101   :  { %v337_v63 = vadd.f32 %v331_v20, %v232_v61  ;;  %v345_v0 = vadd.f32 %v331_v20, %v264_v62  ;;  %v352_v5 = vmax.f32 %v336_v55, 0.0  ;;  %v360_v6 = vmax.f32 %v344_v56, 0.0 }
 0x102   :  { %v355_v3 = vmax.f32 %v339_v59, 0.0  ;;  %v363_v4 = vmax.f32 %v347_v60, 0.0 }
 0x103   :  { %v353_v7 = vmax.f32 %v337_v63, 0.0  ;;  %v361_v8 = vmax.f32 %v345_v0, 0.0 }
 0x104   :  { %v514_v9 = vpack.c.bf16 %v355_v3, %v354_v1  ;;  %v534_v10 = vpack.c.bf16 %v363_v4, %v362_v2 }
 0x105   :  { %v509_v11 = vpack.c.bf16 %v353_v7, %v352_v5  ;;  %v529_v12 = vpack.c.bf16 %v361_v8, %v360_v6 }
 0x106   :  { %538 = vst [vmem:[%s721_s3 + $0x18] sm:$0xff] %v514_v9   ;;  %542 = vst [vmem:[%s721_s3 + $0x38] sm:$0xff] %v534_v10  }
 0x107   :  { %537 = vst [vmem:[%s721_s3 + $0x10] sm:$0xff] %v509_v11   ;;  %541 = vst [vmem:[%s721_s3 + $0x30] sm:$0xff] %v529_v12  }

// kernel: encoder_module_forward.9
= control target key start
LH: loop header
LB: loop body
LE: loop exit
PB: predicated region body
PF: predicated region fallthrough
CT: control target
= control target key end

     0   :  { %v673_v1 = vmov 0   ;;  %s817_s1 = inlined_call_operand.vmem [shape: bf16[128,256], index: 1, kind: input, shape index: {}]   ;;  %s818_s0 = inlined_call_operand.vmem [shape: bf16[128,128], index: 0, kind: input, shape index: {}]   ;;  %s819_s2 = inlined_call_operand.vmem [shape: bf16[128,256], index: 2, kind: output, shape index: {}]  }
   0x1   :  { %v641_v0 = vld [vmem:[%s817_s1 + $0x4] ss:$8 sps:$4 sm:$0xff]   ;;  %272 = vmatprep.mubr.bf16.mxu0 %v673_v1  ;;  %312 = vmatprep.mubr.bf16.mxu1 %v673_v1  ;;  %v643_v2 = vld [vmem:[%s817_s1] ss:$8 sps:$4 sm:$0xff]   ;;  %v644_v3 = vld [vmem:[%s817_s1 + $0x14] ss:$8 sps:$4 sm:$0xff]  }
   0x2   :  { %240 = vmatprep.subr.bf16.mxu0 %v641_v0  ;;  %624 = vmatprep.subr.bf16.mxu1 %v641_v0  ;;  %v646_v4 = vld [vmem:[%s817_s1 + $0x10] ss:$8 sps:$4 sm:$0xff]   ;;  %v647_v5 = vld [vmem:[%s817_s1 + $0x24] ss:$8 sps:$4 sm:$0xff]   ;;  %v649_v6 = vld [vmem:[%s817_s1 + $0x20] ss:$8 sps:$4 sm:$0xff]  }
   0x3   :  { %241 = vmatpush1.bf16.msra.mxu0 %v643_v2  ;;  %632 = vmatpush1.bf16.msra.mxu1 %v643_v2  ;;  %v650_v7 = vld [vmem:[%s817_s1 + $0x34] ss:$8 sps:$4 sm:$0xff]   ;;  %v652_v8 = vld [vmem:[%s817_s1 + $0x30] ss:$8 sps:$4 sm:$0xff]   ;;  %v653_v9 = vld [vmem:[%s817_s1 + $0x44] ss:$8 sps:$4 sm:$0xff]  }
   0x4   :  { %242 = vmatprep.subr.bf16.mxu0 %v644_v3  ;;  %625 = vmatprep.subr.bf16.mxu1 %v644_v3  ;;  %v655_v10 = vld [vmem:[%s817_s1 + $0x40] ss:$8 sps:$4 sm:$0xff]   ;;  %v656_v11 = vld [vmem:[%s817_s1 + $0x54] ss:$8 sps:$4 sm:$0xff]   ;;  %v658_v12 = vld [vmem:[%s817_s1 + $0x50] ss:$8 sps:$4 sm:$0xff]  }
   0x5   :  { %v659_v13 = vld [vmem:[%s817_s1 + $0x64] ss:$8 sps:$4 sm:$0xff]   ;;  %v661_v14 = vld [vmem:[%s817_s1 + $0x60] ss:$8 sps:$4 sm:$0xff]   ;;  %v662_v15 = vld [vmem:[%s817_s1 + $0x74] ss:$8 sps:$4 sm:$0xff]  }
   0x6   :  { %v664_v16 = vld [vmem:[%s817_s1 + $0x70] ss:$8 sps:$4 sm:$0xff]   ;;  %v665_v17 = vld [vmem:[%s818_s0] sm:$0xff]   ;;  %v667_v19 = vld [vmem:[%s818_s0 + $0x8] sm:$0xff]  }
   0x7   :  { %243 = vmatpush1.bf16.msra.mxu0 %v646_v4  ;;  %633 = vmatpush1.bf16.msra.mxu1 %v646_v4  ;;  %v666_v18 = vld [vmem:[%s818_s0 + $0x20] sm:$0xff]   ;;  %v668_v20 = vld [vmem:[%s818_s0 + $0x28] sm:$0xff]   ;;  %v669_v21 = vld [vmem:[%s818_s0 + $0x10] sm:$0xff]  }
   0x8   :  { %244 = vmatprep.subr.bf16.mxu0 %v647_v5  ;;  %626 = vmatprep.subr.bf16.mxu1 %v647_v5  ;;  %v670_v22 = vld [vmem:[%s818_s0 + $0x30] sm:$0xff]   ;;  %v671_v23 = vld [vmem:[%s818_s0 + $0x18] sm:$0xff]  }
   0x9   :  { %v672_v24 = vld [vmem:[%s818_s0 + $0x38] sm:$0xff]  }
   0xb   :  { %245 = vmatpush1.bf16.msra.mxu0 %v649_v6  ;;  %634 = vmatpush1.bf16.msra.mxu1 %v649_v6 }
   0xc   :  { %246 = vmatprep.subr.bf16.mxu0 %v650_v7  ;;  %627 = vmatprep.subr.bf16.mxu1 %v650_v7 }
   0xf   :  { %247 = vmatpush1.bf16.msra.mxu0 %v652_v8  ;;  %635 = vmatpush1.bf16.msra.mxu1 %v652_v8 }
  0x10   :  { %248 = vmatprep.subr.bf16.mxu0 %v653_v9  ;;  %628 = vmatprep.subr.bf16.mxu1 %v653_v9 }
  0x13   :  { %249 = vmatpush1.bf16.msra.mxu0 %v655_v10  ;;  %636 = vmatpush1.bf16.msra.mxu1 %v655_v10 }
  0x14   :  { %250 = vmatprep.subr.bf16.mxu0 %v656_v11  ;;  %629 = vmatprep.subr.bf16.mxu1 %v656_v11 }
  0x17   :  { %251 = vmatpush1.bf16.msra.mxu0 %v658_v12  ;;  %637 = vmatpush1.bf16.msra.mxu1 %v658_v12 }
  0x18   :  { %252 = vmatprep.subr.bf16.mxu0 %v659_v13  ;;  %630 = vmatprep.subr.bf16.mxu1 %v659_v13 }
  0x1b   :  { %253 = vmatpush1.bf16.msra.mxu0 %v661_v14  ;;  %638 = vmatpush1.bf16.msra.mxu1 %v661_v14 }
  0x1c   :  { %254 = vmatprep.subr.bf16.mxu0 %v662_v15  ;;  %631 = vmatprep.subr.bf16.mxu1 %v662_v15 }
  0x1f   :  { %255 = vmatpush1.bf16.msra.mxu0 %v664_v16  ;;  %639 = vmatpush1.bf16.msra.mxu1 %v664_v16 }
  0x22   :  { %273 = vmatmul.mubr.bf16.vlgmr.msra.gmra.mrb[0].mxu0 %v665_v17  ;;  %313 = vmatmul.mubr.bf16.vlgmr.msra.gmra.mrb[0].mxu1 %v666_v18 }
  0x23   :  { %282 = vmatprep.mubr.bf16.mxu0 %v673_v1  ;;  %322 = vmatprep.mubr.bf16.mxu1 %v673_v1 }
  0x2a   :  { %283 = vmatmul.mubr.bf16.gmra.mrb[4].mxu0 %v667_v19  ;;  %323 = vmatmul.mubr.bf16.gmra.mrb[4].mxu1 %v668_v20 }
  0x2b   :  { %292 = vmatprep.mubr.bf16.mxu0 %v673_v1  ;;  %332 = vmatprep.mubr.bf16.mxu1 %v673_v1 }
  0x32   :  { %293 = vmatmul.mubr.bf16.gmra.mrb[8].mxu0 %v669_v21  ;;  %333 = vmatmul.mubr.bf16.gmra.mrb[8].mxu1 %v670_v22 }
  0x33   :  { %302 = vmatprep.mubr.bf16.mxu0 %v673_v1  ;;  %342 = vmatprep.mubr.bf16.mxu1 %v673_v1 }
  0x3a   :  { %303 = vmatmul.mubr.bf16.gmra.mrb[12].mxu0 %v671_v23  ;;  %343 = vmatmul.mubr.bf16.gmra.mrb[12].mxu1 %v672_v24 }
  0xf5   :  { %v274_v25 = vpop.f32.mrb[0].mxu0  ;;  %v314_v26 = vpop.f32.mrb[0].mxu1 }
  0xf6   :  { %v276_v27 = vpop.f32.mrb[1].mxu0  ;;  %v316_v28 = vpop.f32.mrb[1].mxu1 }
  0xf7   :  { %v608_v29 = vpack.c.bf16 %v276_v27, %v274_v25  ;;  %v616_v30 = vpack.c.bf16 %v316_v28, %v314_v26  ;;  %v278_v31 = vpop.f32.mrb[2].mxu0  ;;  %v318_v32 = vpop.f32.mrb[2].mxu1 }
  0xf8   :  { %v280_v33 = vpop.f32.mrb[3].mxu0  ;;  %v320_v34 = vpop.f32.mrb[3].mxu1 }
  0xf9   :  { %548 = vst [vmem:[%s819_s2] sm:$0xff] %v608_v29  ;;  %556 = vst [vmem:[%s819_s2 + $0x40] sm:$0xff] %v616_v30  ;;  %v609_v35 = vpack.c.bf16 %v280_v33, %v278_v31  ;;  %v617_v36 = vpack.c.bf16 %v320_v34, %v318_v32 }
  0xfb   :  { %549 = vst [vmem:[%s819_s2 + $0x8] sm:$0xff] %v609_v35  ;;  %557 = vst [vmem:[%s819_s2 + $0x48] sm:$0xff] %v617_v36 }
  0xfd   :  { %v284_v37 = vpop.f32.mrb[4].mxu0  ;;  %v324_v38 = vpop.f32.mrb[4].mxu1 }
  0xfe   :  { %v286_v39 = vpop.f32.mrb[5].mxu0  ;;  %v326_v40 = vpop.f32.mrb[5].mxu1 }
  0xff   :  { %v610_v41 = vpack.c.bf16 %v286_v39, %v284_v37  ;;  %v618_v42 = vpack.c.bf16 %v326_v40, %v324_v38  ;;  %v288_v43 = vpop.f32.mrb[6].mxu0  ;;  %v328_v44 = vpop.f32.mrb[6].mxu1 }
 0x100   :  { %v290_v45 = vpop.f32.mrb[7].mxu0  ;;  %v330_v46 = vpop.f32.mrb[7].mxu1 }
 0x101   :  { %550 = vst [vmem:[%s819_s2 + $0x10] sm:$0xff] %v610_v41  ;;  %558 = vst [vmem:[%s819_s2 + $0x50] sm:$0xff] %v618_v42  ;;  %v611_v47 = vpack.c.bf16 %v290_v45, %v288_v43  ;;  %v619_v48 = vpack.c.bf16 %v330_v46, %v328_v44 }
 0x103   :  { %551 = vst [vmem:[%s819_s2 + $0x18] sm:$0xff] %v611_v47  ;;  %559 = vst [vmem:[%s819_s2 + $0x58] sm:$0xff] %v619_v48 }
 0x105   :  { %v294_v49 = vpop.f32.mrb[8].mxu0  ;;  %v334_v50 = vpop.f32.mrb[8].mxu1 }
 0x106   :  { %v296_v51 = vpop.f32.mrb[9].mxu0  ;;  %v336_v52 = vpop.f32.mrb[9].mxu1 }
 0x107   :  { %v612_v53 = vpack.c.bf16 %v296_v51, %v294_v49  ;;  %v620_v54 = vpack.c.bf16 %v336_v52, %v334_v50  ;;  %v298_v55 = vpop.f32.mrb[10].mxu0  ;;  %v338_v56 = vpop.f32.mrb[10].mxu1 }
 0x108   :  { %v300_v57 = vpop.f32.mrb[11].mxu0  ;;  %v340_v58 = vpop.f32.mrb[11].mxu1 }
 0x109   :  { %552 = vst [vmem:[%s819_s2 + $0x20] sm:$0xff] %v612_v53  ;;  %560 = vst [vmem:[%s819_s2 + $0x60] sm:$0xff] %v620_v54  ;;  %v613_v59 = vpack.c.bf16 %v300_v57, %v298_v55  ;;  %v621_v60 = vpack.c.bf16 %v340_v58, %v338_v56 }
 0x10b   :  { %553 = vst [vmem:[%s819_s2 + $0x28] sm:$0xff] %v613_v59  ;;  %561 = vst [vmem:[%s819_s2 + $0x68] sm:$0xff] %v621_v60 }
 0x10d   :  { %v304_v61 = vpop.f32.mrb[12].mxu0  ;;  %v344_v62 = vpop.f32.mrb[12].mxu1 }
 0x10e   :  { %v306_v63 = vpop.f32.mrb[13].mxu0  ;;  %v346_v0 = vpop.f32.mrb[13].mxu1 }
 0x10f   :  { %v614_v1 = vpack.c.bf16 %v306_v63, %v304_v61  ;;  %v622_v2 = vpack.c.bf16 %v346_v0, %v344_v62  ;;  %v308_v3 = vpop.f32.mrb[14].mxu0  ;;  %v348_v4 = vpop.f32.mrb[14].mxu1 }
 0x110   :  { %v310_v5 = vpop.f32.mrb[15].mxu0  ;;  %v350_v6 = vpop.f32.mrb[15].mxu1 }
 0x111   :  { %554 = vst [vmem:[%s819_s2 + $0x30] sm:$0xff] %v614_v1  ;;  %562 = vst [vmem:[%s819_s2 + $0x70] sm:$0xff] %v622_v2  ;;  %v615_v7 = vpack.c.bf16 %v310_v5, %v308_v3  ;;  %v623_v8 = vpack.c.bf16 %v350_v6, %v348_v4 }
 0x113   :  { %555 = vst [vmem:[%s819_s2 + $0x38] sm:$0xff] %v615_v7  ;;  %563 = vst [vmem:[%s819_s2 + $0x78] sm:$0xff] %v623_v8 }

// kernel: encoder_module_forward.13
= control target key start
LH: loop header
LB: loop body
LE: loop exit
PB: predicated region body
PF: predicated region fallthrough
CT: control target
= control target key end

     0   :  { %s670_s1 = inlined_call_operand.vmem [shape: bf16[128,128], index: 1, kind: input, shape index: {}]   ;;  %s671_s0 = inlined_call_operand.vmem [shape: bf16[128,128], index: 0, kind: input, shape index: {}]   ;;  %s672_s2 = inlined_call_operand.vmem [shape: bf16[128,128], index: 2, kind: output, shape index: {}]  }
   0x1   :  { %v567_v0 = vld [vmem:[%s670_s1] sm:$0xff]   ;;  %v568_v1 = vld [vmem:[%s670_s1 + $0x8] sm:$0xff]   ;;  %v569_v2 = vld [vmem:[%s670_s1 + $0x10] sm:$0xff]  }
   0x2   :  { %519 = vmatprep.subr.bf16.mxu0 %v567_v0  ;;  %551 = vmatprep.subr.bf16.mxu1 %v567_v0  ;;  %v570_v3 = vld [vmem:[%s670_s1 + $0x18] sm:$0xff]   ;;  %v575_v4 = vld [vmem:[%s671_s0] sm:$0xff]   ;;  %v572_v7 = vld [vmem:[%s670_s1 + $0x28] sm:$0xff]  }
   0x3   :  { %520 = vmatpush3.bf16.msra.mxu0 %v567_v0  ;;  %559 = vmatpush3.bf16.msra.mxu1 %v567_v0  ;;  %v576_v5 = vld [vmem:[%s671_s0 + $0x20] sm:$0xff]   ;;  %v573_v8 = vld [vmem:[%s670_s1 + $0x30] sm:$0xff]   ;;  %v574_v9 = vld [vmem:[%s670_s1 + $0x38] sm:$0xff]  }
   0x4   :  { %521 = vmatprep.subr.bf16.mxu0 %v568_v1  ;;  %552 = vmatprep.subr.bf16.mxu1 %v568_v1  ;;  %v571_v6 = vld [vmem:[%s670_s1 + $0x20] sm:$0xff]   ;;  %v577_v10 = vld [vmem:[%s671_s0 + $0x8] sm:$0xff]   ;;  %v579_v12 = vld [vmem:[%s671_s0 + $0x10] sm:$0xff]  }
   0x5   :  { %535 = vmatprep.mubr.bf16.mxu0 %v575_v4  ;;  %543 = vmatprep.mubr.bf16.mxu1 %v576_v5  ;;  %v578_v11 = vld [vmem:[%s671_s0 + $0x28] sm:$0xff]   ;;  %v580_v13 = vld [vmem:[%s671_s0 + $0x30] sm:$0xff]   ;;  %v581_v14 = vld [vmem:[%s671_s0 + $0x18] sm:$0xff]  }
   0x6   :  { %v582_v15 = vld [vmem:[%s671_s0 + $0x38] sm:$0xff]  }
   0x7   :  { %522 = vmatpush3.bf16.msra.mxu0 %v568_v1  ;;  %560 = vmatpush3.bf16.msra.mxu1 %v568_v1 }
   0x8   :  { %523 = vmatprep.subr.bf16.mxu0 %v569_v2  ;;  %553 = vmatprep.subr.bf16.mxu1 %v569_v2 }
   0xb   :  { %524 = vmatpush3.bf16.msra.mxu0 %v569_v2  ;;  %561 = vmatpush3.bf16.msra.mxu1 %v569_v2 }
   0xc   :  { %525 = vmatprep.subr.bf16.mxu0 %v570_v3  ;;  %554 = vmatprep.subr.bf16.mxu1 %v570_v3 }
   0xf   :  { %526 = vmatpush3.bf16.msra.mxu0 %v570_v3  ;;  %562 = vmatpush3.bf16.msra.mxu1 %v570_v3 }
  0x10   :  { %527 = vmatprep.subr.bf16.mxu0 %v571_v6  ;;  %555 = vmatprep.subr.bf16.mxu1 %v571_v6 }
  0x13   :  { %528 = vmatpush3.bf16.msra.mxu0 %v571_v6  ;;  %563 = vmatpush3.bf16.msra.mxu1 %v571_v6 }
  0x14   :  { %529 = vmatprep.subr.bf16.mxu0 %v572_v7  ;;  %556 = vmatprep.subr.bf16.mxu1 %v572_v7 }
  0x17   :  { %530 = vmatpush3.bf16.msra.mxu0 %v572_v7  ;;  %564 = vmatpush3.bf16.msra.mxu1 %v572_v7 }
  0x18   :  { %531 = vmatprep.subr.bf16.mxu0 %v573_v8  ;;  %557 = vmatprep.subr.bf16.mxu1 %v573_v8 }
  0x1b   :  { %532 = vmatpush3.bf16.msra.mxu0 %v573_v8  ;;  %565 = vmatpush3.bf16.msra.mxu1 %v573_v8 }
  0x1c   :  { %533 = vmatprep.subr.bf16.mxu0 %v574_v9  ;;  %558 = vmatprep.subr.bf16.mxu1 %v574_v9 }
  0x1f   :  { %534 = vmatpush3.bf16.msra.mxu0 %v574_v9  ;;  %566 = vmatpush3.bf16.msra.mxu1 %v574_v9 }
  0x22   :  { %536 = vmatmul.mubr.bf16.vlgmr.msra.gmra.mrb[0].mxu0 %v577_v10  ;;  %544 = vmatmul.mubr.bf16.vlgmr.msra.gmra.mrb[0].mxu1 %v578_v11 }
  0x23   :  { %539 = vmatprep.mubr.bf16.mxu0 %v579_v12  ;;  %547 = vmatprep.mubr.bf16.mxu1 %v580_v13 }
  0x2a   :  { %540 = vmatmul.mubr.bf16.gmra.mrb[4].mxu0 %v581_v14  ;;  %548 = vmatmul.mubr.bf16.gmra.mrb[4].mxu1 %v582_v15 }
  0xf5   :  { %v537_v16 = vpop.f32.mrb[0].mxu0  ;;  %v545_v17 = vpop.f32.mrb[0].mxu1 }
  0xf6   :  { %v210_v18 = vpop.f32.mrb[1].mxu0  ;;  %v242_v19 = vpop.f32.mrb[1].mxu1 }
  0xf7   :  { %v538_v20 = vpop.f32.mrb[2].mxu0  ;;  %v546_v21 = vpop.f32.mrb[2].mxu1 }
  0xf8   :  { %v464_v22 = vpack.c.bf16 %v538_v20, %v537_v16  ;;  %v484_v23 = vpack.c.bf16 %v546_v21, %v545_v17  ;;  %v213_v24 = vpop.f32.mrb[3].mxu0  ;;  %v245_v25 = vpop.f32.mrb[3].mxu1 }
  0xf9   :  { %v459_v26 = vpack.c.bf16 %v213_v24, %v210_v18  ;;  %v479_v27 = vpack.c.bf16 %v245_v25, %v242_v19 }
  0xfa   :  { %496 = vst [vmem:[%s672_s2 + $0x8] sm:$0xff] %v464_v22   ;;  %500 = vst [vmem:[%s672_s2 + $0x28] sm:$0xff] %v484_v23  }
  0xfb   :  { %460 = vst [vmem:[%s672_s2] sm:$0xff] %v459_v26   ;;  %499 = vst [vmem:[%s672_s2 + $0x20] sm:$0xff] %v479_v27  }
  0xfd   :  { %v541_v28 = vpop.f32.mrb[4].mxu0  ;;  %v549_v29 = vpop.f32.mrb[4].mxu1 }
  0xfe   :  { %v226_v30 = vpop.f32.mrb[5].mxu0  ;;  %v258_v31 = vpop.f32.mrb[5].mxu1 }
  0xff   :  { %v542_v32 = vpop.f32.mrb[6].mxu0  ;;  %v550_v33 = vpop.f32.mrb[6].mxu1 }
 0x100   :  { %v474_v34 = vpack.c.bf16 %v542_v32, %v541_v28  ;;  %v494_v35 = vpack.c.bf16 %v550_v33, %v549_v29  ;;  %v229_v36 = vpop.f32.mrb[7].mxu0  ;;  %v261_v37 = vpop.f32.mrb[7].mxu1 }
 0x101   :  { %v469_v38 = vpack.c.bf16 %v229_v36, %v226_v30  ;;  %v489_v39 = vpack.c.bf16 %v261_v37, %v258_v31 }
 0x102   :  { %498 = vst [vmem:[%s672_s2 + $0x18] sm:$0xff] %v474_v34   ;;  %502 = vst [vmem:[%s672_s2 + $0x38] sm:$0xff] %v494_v35  }
 0x103   :  { %497 = vst [vmem:[%s672_s2 + $0x10] sm:$0xff] %v469_v38   ;;  %501 = vst [vmem:[%s672_s2 + $0x30] sm:$0xff] %v489_v39  }

// kernel: encoder_module_forward.15
= control target key start
LH: loop header
LB: loop body
LE: loop exit
PB: predicated region body
PF: predicated region fallthrough
CT: control target
= control target key end

     0   :  { %v328_v16 = vlaneseq  ;;  %s600_s1 = inlined_call_operand.vmem [shape: bf16[128,128], index: 1, kind: input, shape index: {}]   ;;  %s601_s0 = inlined_call_operand.vmem [shape: bf16[128,128], index: 0, kind: input, shape index: {}]   ;;  %s602_s2 = inlined_call_operand.vmem [shape: f32[8,128], index: 2, kind: input, shape index: {}]   ;;  %s603_s3 = inlined_call_operand.vmem [shape: f32[128,128], index: 3, kind: output, shape index: {}]  }
   0x1   :  { %v465_v0 = vld [vmem:[%s600_s1] sm:$0xff]   ;;  %v466_v1 = vld [vmem:[%s600_s1 + $0x8] sm:$0xff]   ;;  %v467_v2 = vld [vmem:[%s600_s1 + $0x10] sm:$0xff]  }
   0x2   :  { %416 = vmatprep.subr.bf16.mxu0 %v465_v0  ;;  %448 = vmatprep.subr.bf16.mxu1 %v465_v0  ;;  %v468_v3 = vld [vmem:[%s600_s1 + $0x18] sm:$0xff]   ;;  %v473_v4 = vld [vmem:[%s601_s0] sm:$0xff]   ;;  %v470_v7 = vld [vmem:[%s600_s1 + $0x28] sm:$0xff]   ;;  %v329_v17 = vshrl.u32 %v328_v16, 7 }
   0x3   :  { %417 = vmatpush3.bf16.msra.mxu0 %v465_v0  ;;  %456 = vmatpush3.bf16.msra.mxu1 %v465_v0  ;;  %v474_v5 = vld [vmem:[%s601_s0 + $0x20] sm:$0xff]   ;;  %v471_v8 = vld [vmem:[%s600_s1 + $0x30] sm:$0xff]   ;;  %v472_v9 = vld [vmem:[%s600_s1 + $0x38] sm:$0xff]  }
   0x4   :  { %418 = vmatprep.subr.bf16.mxu0 %v466_v1  ;;  %449 = vmatprep.subr.bf16.mxu1 %v466_v1  ;;  %v469_v6 = vld [vmem:[%s600_s1 + $0x20] sm:$0xff]   ;;  %v475_v10 = vld [vmem:[%s601_s0 + $0x8] sm:$0xff]   ;;  %v477_v12 = vld [vmem:[%s601_s0 + $0x10] sm:$0xff]   ;;  %v330_v18 = vsub.s32 0, %v329_v17 }
   0x5   :  { %432 = vmatprep.mubr.bf16.mxu0 %v473_v4  ;;  %440 = vmatprep.mubr.bf16.mxu1 %v474_v5  ;;  %v476_v11 = vld [vmem:[%s601_s0 + $0x28] sm:$0xff]   ;;  %v478_v13 = vld [vmem:[%s601_s0 + $0x30] sm:$0xff]   ;;  %v479_v14 = vld [vmem:[%s601_s0 + $0x18] sm:$0xff]  }
   0x6   :  { %v480_v15 = vld [vmem:[%s601_s0 + $0x38] sm:$0xff]   ;;  %v311_v19 = vld [vmem:[%s602_s2] sm:$0xff] }
   0x7   :  { %419 = vmatpush3.bf16.msra.mxu0 %v466_v1  ;;  %457 = vmatpush3.bf16.msra.mxu1 %v466_v1  ;;  %v331_v20 = vrot.slane %v311_v19, %v330_v18 }
   0x8   :  { %420 = vmatprep.subr.bf16.mxu0 %v467_v2  ;;  %450 = vmatprep.subr.bf16.mxu1 %v467_v2 }
   0xb   :  { %421 = vmatpush3.bf16.msra.mxu0 %v467_v2  ;;  %458 = vmatpush3.bf16.msra.mxu1 %v467_v2 }
   0xc   :  { %422 = vmatprep.subr.bf16.mxu0 %v468_v3  ;;  %451 = vmatprep.subr.bf16.mxu1 %v468_v3 }
   0xf   :  { %423 = vmatpush3.bf16.msra.mxu0 %v468_v3  ;;  %459 = vmatpush3.bf16.msra.mxu1 %v468_v3 }
  0x10   :  { %424 = vmatprep.subr.bf16.mxu0 %v469_v6  ;;  %452 = vmatprep.subr.bf16.mxu1 %v469_v6 }
  0x13   :  { %425 = vmatpush3.bf16.msra.mxu0 %v469_v6  ;;  %460 = vmatpush3.bf16.msra.mxu1 %v469_v6 }
  0x14   :  { %426 = vmatprep.subr.bf16.mxu0 %v470_v7  ;;  %453 = vmatprep.subr.bf16.mxu1 %v470_v7 }
  0x17   :  { %427 = vmatpush3.bf16.msra.mxu0 %v470_v7  ;;  %461 = vmatpush3.bf16.msra.mxu1 %v470_v7 }
  0x18   :  { %428 = vmatprep.subr.bf16.mxu0 %v471_v8  ;;  %454 = vmatprep.subr.bf16.mxu1 %v471_v8 }
  0x1b   :  { %429 = vmatpush3.bf16.msra.mxu0 %v471_v8  ;;  %462 = vmatpush3.bf16.msra.mxu1 %v471_v8 }
  0x1c   :  { %430 = vmatprep.subr.bf16.mxu0 %v472_v9  ;;  %455 = vmatprep.subr.bf16.mxu1 %v472_v9 }
  0x1f   :  { %431 = vmatpush3.bf16.msra.mxu0 %v472_v9  ;;  %463 = vmatpush3.bf16.msra.mxu1 %v472_v9 }
  0x22   :  { %433 = vmatmul.mubr.bf16.vlgmr.msra.gmra.mrb[0].mxu0 %v475_v10  ;;  %441 = vmatmul.mubr.bf16.vlgmr.msra.gmra.mrb[0].mxu1 %v476_v11 }
  0x23   :  { %436 = vmatprep.mubr.bf16.mxu0 %v477_v12  ;;  %444 = vmatprep.mubr.bf16.mxu1 %v478_v13 }
  0x2a   :  { %437 = vmatmul.mubr.bf16.gmra.mrb[4].mxu0 %v479_v14  ;;  %445 = vmatmul.mubr.bf16.gmra.mrb[4].mxu1 %v480_v15 }
  0xf5   :  { %v434_v21 = vpop.f32.mrb[0].mxu0  ;;  %v442_v22 = vpop.f32.mrb[0].mxu1 }
  0xf6   :  { %v213_v23 = vpop.f32.mrb[1].mxu0  ;;  %v245_v24 = vpop.f32.mrb[1].mxu1  ;;  %v334_v27 = vadd.f32 %v434_v21, %v331_v20  ;;  %v342_v28 = vadd.f32 %v442_v22, %v331_v20 }
  0xf7   :  { %v435_v25 = vpop.f32.mrb[2].mxu0  ;;  %v443_v26 = vpop.f32.mrb[2].mxu1  ;;  %v332_v31 = vadd.f32 %v331_v20, %v213_v23  ;;  %v340_v32 = vadd.f32 %v331_v20, %v245_v24 }
  0xf8   :  { %v216_v29 = vpop.f32.mrb[3].mxu0  ;;  %v248_v30 = vpop.f32.mrb[3].mxu1  ;;  %v350_v33 = vmax.f32 %v334_v27, 0.0  ;;  %v358_v34 = vmax.f32 %v342_v28, 0.0  ;;  %v335_v35 = vadd.f32 %v435_v25, %v331_v20  ;;  %v343_v36 = vadd.f32 %v443_v26, %v331_v20 }
  0xf9   :  { %v348_v37 = vmax.f32 %v332_v31, 0.0  ;;  %v356_v38 = vmax.f32 %v340_v32, 0.0  ;;  %v333_v39 = vadd.f32 %v331_v20, %v216_v29  ;;  %v341_v40 = vadd.f32 %v331_v20, %v248_v30 }
  0xfa   :  { %366 = vst [vmem:[%s603_s3 + $0x10] sm:$0xff] %v350_v33  ;;  %374 = vst [vmem:[%s603_s3 + $0x50] sm:$0xff] %v358_v34  ;;  %v351_v41 = vmax.f32 %v335_v35, 0.0  ;;  %v359_v42 = vmax.f32 %v343_v36, 0.0 }
  0xfb   :  { %364 = vst [vmem:[%s603_s3] sm:$0xff] %v348_v37  ;;  %372 = vst [vmem:[%s603_s3 + $0x40] sm:$0xff] %v356_v38  ;;  %v349_v43 = vmax.f32 %v333_v39, 0.0  ;;  %v357_v44 = vmax.f32 %v341_v40, 0.0 }
  0xfc   :  { %367 = vst [vmem:[%s603_s3 + $0x18] sm:$0xff] %v351_v41  ;;  %375 = vst [vmem:[%s603_s3 + $0x58] sm:$0xff] %v359_v42 }
  0xfd   :  { %v438_v45 = vpop.f32.mrb[4].mxu0  ;;  %v446_v46 = vpop.f32.mrb[4].mxu1  ;;  %365 = vst [vmem:[%s603_s3 + $0x8] sm:$0xff] %v349_v43  ;;  %373 = vst [vmem:[%s603_s3 + $0x48] sm:$0xff] %v357_v44 }
  0xfe   :  { %v229_v47 = vpop.f32.mrb[5].mxu0  ;;  %v261_v48 = vpop.f32.mrb[5].mxu1  ;;  %v338_v51 = vadd.f32 %v438_v45, %v331_v20  ;;  %v346_v52 = vadd.f32 %v446_v46, %v331_v20 }
  0xff   :  { %v439_v49 = vpop.f32.mrb[6].mxu0  ;;  %v447_v50 = vpop.f32.mrb[6].mxu1  ;;  %v336_v55 = vadd.f32 %v331_v20, %v229_v47  ;;  %v344_v56 = vadd.f32 %v331_v20, %v261_v48 }
 0x100   :  { %v232_v53 = vpop.f32.mrb[7].mxu0  ;;  %v264_v54 = vpop.f32.mrb[7].mxu1  ;;  %v354_v57 = vmax.f32 %v338_v51, 0.0  ;;  %v362_v58 = vmax.f32 %v346_v52, 0.0  ;;  %v339_v59 = vadd.f32 %v439_v49, %v331_v20  ;;  %v347_v60 = vadd.f32 %v447_v50, %v331_v20 }
 0x101   :  { %v352_v61 = vmax.f32 %v336_v55, 0.0  ;;  %v360_v62 = vmax.f32 %v344_v56, 0.0  ;;  %v337_v63 = vadd.f32 %v331_v20, %v232_v53  ;;  %v345_v0 = vadd.f32 %v331_v20, %v264_v54 }
 0x102   :  { %370 = vst [vmem:[%s603_s3 + $0x30] sm:$0xff] %v354_v57  ;;  %378 = vst [vmem:[%s603_s3 + $0x70] sm:$0xff] %v362_v58  ;;  %v355_v1 = vmax.f32 %v339_v59, 0.0  ;;  %v363_v2 = vmax.f32 %v347_v60, 0.0 }
 0x103   :  { %368 = vst [vmem:[%s603_s3 + $0x20] sm:$0xff] %v352_v61  ;;  %376 = vst [vmem:[%s603_s3 + $0x60] sm:$0xff] %v360_v62  ;;  %v353_v3 = vmax.f32 %v337_v63, 0.0  ;;  %v361_v4 = vmax.f32 %v345_v0, 0.0 }
 0x104   :  { %371 = vst [vmem:[%s603_s3 + $0x38] sm:$0xff] %v355_v1  ;;  %379 = vst [vmem:[%s603_s3 + $0x78] sm:$0xff] %v363_v2 }
 0x105   :  { %369 = vst [vmem:[%s603_s3 + $0x28] sm:$0xff] %v353_v3  ;;  %377 = vst [vmem:[%s603_s3 + $0x68] sm:$0xff] %v361_v4 }

// kernel: encoder_module_forward.10
= control target key start
LH: loop header
LB: loop body
LE: loop exit
PB: predicated region body
PF: predicated region fallthrough
CT: control target
= control target key end

     0   :  { %v750_v1 = vmov 0   ;;  %v457_v25 = vlaneseq  ;;  %s941_s1 = inlined_call_operand.vmem [shape: bf16[128,256], index: 1, kind: input, shape index: {}]   ;;  %s942_s0 = inlined_call_operand.vmem [shape: bf16[128,128], index: 0, kind: input, shape index: {}]   ;;  %s943_s2 = inlined_call_operand.vmem [shape: f32[8,256], index: 2, kind: input, shape index: {}]   ;;  %s944_s3 = inlined_call_operand.vmem [shape: bf16[128,256], index: 3, kind: output, shape index: {}]  }
   0x1   :  { %v718_v0 = vld [vmem:[%s941_s1 + $0x4] ss:$8 sps:$4 sm:$0xff]   ;;  %275 = vmatprep.mubr.bf16.mxu0 %v750_v1  ;;  %315 = vmatprep.mubr.bf16.mxu1 %v750_v1  ;;  %v720_v2 = vld [vmem:[%s941_s1] ss:$8 sps:$4 sm:$0xff]   ;;  %v721_v3 = vld [vmem:[%s941_s1 + $0x14] ss:$8 sps:$4 sm:$0xff]  }
   0x2   :  { %243 = vmatprep.subr.bf16.mxu0 %v718_v0  ;;  %701 = vmatprep.subr.bf16.mxu1 %v718_v0  ;;  %v723_v4 = vld [vmem:[%s941_s1 + $0x10] ss:$8 sps:$4 sm:$0xff]   ;;  %v724_v5 = vld [vmem:[%s941_s1 + $0x24] ss:$8 sps:$4 sm:$0xff]   ;;  %v726_v6 = vld [vmem:[%s941_s1 + $0x20] ss:$8 sps:$4 sm:$0xff]  }
   0x3   :  { %244 = vmatpush1.bf16.msra.mxu0 %v720_v2  ;;  %709 = vmatpush1.bf16.msra.mxu1 %v720_v2  ;;  %v727_v7 = vld [vmem:[%s941_s1 + $0x34] ss:$8 sps:$4 sm:$0xff]   ;;  %v729_v8 = vld [vmem:[%s941_s1 + $0x30] ss:$8 sps:$4 sm:$0xff]   ;;  %v730_v9 = vld [vmem:[%s941_s1 + $0x44] ss:$8 sps:$4 sm:$0xff]  }
   0x4   :  { %245 = vmatprep.subr.bf16.mxu0 %v721_v3  ;;  %702 = vmatprep.subr.bf16.mxu1 %v721_v3  ;;  %v732_v10 = vld [vmem:[%s941_s1 + $0x40] ss:$8 sps:$4 sm:$0xff]   ;;  %v733_v11 = vld [vmem:[%s941_s1 + $0x54] ss:$8 sps:$4 sm:$0xff]   ;;  %v735_v12 = vld [vmem:[%s941_s1 + $0x50] ss:$8 sps:$4 sm:$0xff]  }
   0x5   :  { %v736_v13 = vld [vmem:[%s941_s1 + $0x64] ss:$8 sps:$4 sm:$0xff]   ;;  %v738_v14 = vld [vmem:[%s941_s1 + $0x60] ss:$8 sps:$4 sm:$0xff]   ;;  %v739_v15 = vld [vmem:[%s941_s1 + $0x74] ss:$8 sps:$4 sm:$0xff]  }
   0x6   :  { %v741_v16 = vld [vmem:[%s941_s1 + $0x70] ss:$8 sps:$4 sm:$0xff]   ;;  %v742_v17 = vld [vmem:[%s942_s0] sm:$0xff]   ;;  %v744_v19 = vld [vmem:[%s942_s0 + $0x8] sm:$0xff]   ;;  %v458_v26 = vshrl.u32 %v457_v25, 7 }
   0x7   :  { %246 = vmatpush1.bf16.msra.mxu0 %v723_v4  ;;  %710 = vmatpush1.bf16.msra.mxu1 %v723_v4  ;;  %v743_v18 = vld [vmem:[%s942_s0 + $0x20] sm:$0xff]   ;;  %v745_v20 = vld [vmem:[%s942_s0 + $0x28] sm:$0xff]   ;;  %v746_v21 = vld [vmem:[%s942_s0 + $0x10] sm:$0xff]  }
   0x8   :  { %247 = vmatprep.subr.bf16.mxu0 %v724_v5  ;;  %703 = vmatprep.subr.bf16.mxu1 %v724_v5  ;;  %v747_v22 = vld [vmem:[%s942_s0 + $0x30] sm:$0xff]   ;;  %v748_v23 = vld [vmem:[%s942_s0 + $0x18] sm:$0xff]   ;;  %v459_v27 = vsub.s32 0, %v458_v26  ;;  %v423_v28 = vld [vmem:[%s943_s2] sm:$0xff] }
   0x9   :  { %v749_v24 = vld [vmem:[%s942_s0 + $0x38] sm:$0xff]   ;;  %v424_v29 = vld [vmem:[%s943_s2 + $0x8] sm:$0xff] }
   0xa   :  { %v857_v30 = vrot.slane %v423_v28, %v459_v27  ;;  %v859_v31 = vrot.slane %v424_v29, %v459_v27 }
   0xb   :  { %248 = vmatpush1.bf16.msra.mxu0 %v726_v6  ;;  %711 = vmatpush1.bf16.msra.mxu1 %v726_v6 }
   0xc   :  { %249 = vmatprep.subr.bf16.mxu0 %v727_v7  ;;  %704 = vmatprep.subr.bf16.mxu1 %v727_v7 }
   0xf   :  { %250 = vmatpush1.bf16.msra.mxu0 %v729_v8  ;;  %712 = vmatpush1.bf16.msra.mxu1 %v729_v8 }
  0x10   :  { %251 = vmatprep.subr.bf16.mxu0 %v730_v9  ;;  %705 = vmatprep.subr.bf16.mxu1 %v730_v9 }
  0x13   :  { %252 = vmatpush1.bf16.msra.mxu0 %v732_v10  ;;  %713 = vmatpush1.bf16.msra.mxu1 %v732_v10 }
  0x14   :  { %253 = vmatprep.subr.bf16.mxu0 %v733_v11  ;;  %706 = vmatprep.subr.bf16.mxu1 %v733_v11 }
  0x17   :  { %254 = vmatpush1.bf16.msra.mxu0 %v735_v12  ;;  %714 = vmatpush1.bf16.msra.mxu1 %v735_v12 }
  0x18   :  { %255 = vmatprep.subr.bf16.mxu0 %v736_v13  ;;  %707 = vmatprep.subr.bf16.mxu1 %v736_v13 }
  0x1b   :  { %256 = vmatpush1.bf16.msra.mxu0 %v738_v14  ;;  %715 = vmatpush1.bf16.msra.mxu1 %v738_v14 }
  0x1c   :  { %257 = vmatprep.subr.bf16.mxu0 %v739_v15  ;;  %708 = vmatprep.subr.bf16.mxu1 %v739_v15 }
  0x1f   :  { %258 = vmatpush1.bf16.msra.mxu0 %v741_v16  ;;  %716 = vmatpush1.bf16.msra.mxu1 %v741_v16 }
  0x22   :  { %276 = vmatmul.mubr.bf16.vlgmr.msra.gmra.mrb[0].mxu0 %v742_v17  ;;  %316 = vmatmul.mubr.bf16.vlgmr.msra.gmra.mrb[0].mxu1 %v743_v18 }
  0x23   :  { %285 = vmatprep.mubr.bf16.mxu0 %v750_v1  ;;  %325 = vmatprep.mubr.bf16.mxu1 %v750_v1 }
  0x2a   :  { %286 = vmatmul.mubr.bf16.gmra.mrb[4].mxu0 %v744_v19  ;;  %326 = vmatmul.mubr.bf16.gmra.mrb[4].mxu1 %v745_v20 }
  0x2b   :  { %295 = vmatprep.mubr.bf16.mxu0 %v750_v1  ;;  %335 = vmatprep.mubr.bf16.mxu1 %v750_v1 }
  0x32   :  { %296 = vmatmul.mubr.bf16.gmra.mrb[8].mxu0 %v746_v21  ;;  %336 = vmatmul.mubr.bf16.gmra.mrb[8].mxu1 %v747_v22 }
  0x33   :  { %305 = vmatprep.mubr.bf16.mxu0 %v750_v1  ;;  %345 = vmatprep.mubr.bf16.mxu1 %v750_v1 }
  0x3a   :  { %306 = vmatmul.mubr.bf16.gmra.mrb[12].mxu0 %v748_v23  ;;  %346 = vmatmul.mubr.bf16.gmra.mrb[12].mxu1 %v749_v24 }
  0xf5   :  { %v277_v32 = vpop.f32.mrb[0].mxu0  ;;  %v317_v33 = vpop.f32.mrb[0].mxu1 }
  0xf6   :  { %v465_v34 = vadd.f32 %v857_v30, %v277_v32  ;;  %v481_v35 = vadd.f32 %v857_v30, %v317_v33  ;;  %v279_v36 = vpop.f32.mrb[1].mxu0  ;;  %v319_v37 = vpop.f32.mrb[1].mxu1 }
  0xf7   :  { %v466_v38 = vadd.f32 %v859_v31, %v279_v36  ;;  %v482_v39 = vadd.f32 %v859_v31, %v319_v37  ;;  %v281_v40 = vpop.f32.mrb[2].mxu0  ;;  %v321_v41 = vpop.f32.mrb[2].mxu1 }
  0xf8   :  { %v497_v42 = vmax.f32 %v465_v34, 0.0  ;;  %v513_v43 = vmax.f32 %v481_v35, 0.0  ;;  %v467_v44 = vadd.f32 %v857_v30, %v281_v40  ;;  %v483_v45 = vadd.f32 %v857_v30, %v321_v41  ;;  %v283_v46 = vpop.f32.mrb[3].mxu0  ;;  %v323_v47 = vpop.f32.mrb[3].mxu1 }
  0xf9   :  { %v498_v48 = vmax.f32 %v466_v38, 0.0  ;;  %v514_v49 = vmax.f32 %v482_v39, 0.0  ;;  %v468_v50 = vadd.f32 %v859_v31, %v283_v46  ;;  %v484_v51 = vadd.f32 %v859_v31, %v323_v47 }
  0xfa   :  { %v499_v52 = vmax.f32 %v467_v44, 0.0  ;;  %v515_v53 = vmax.f32 %v483_v45, 0.0 }
  0xfb   :  { %v685_v54 = vpack.c.bf16 %v498_v48, %v497_v42  ;;  %v693_v55 = vpack.c.bf16 %v514_v49, %v513_v43  ;;  %v500_v56 = vmax.f32 %v468_v50, 0.0  ;;  %v516_v57 = vmax.f32 %v484_v51, 0.0 }
  0xfd   :  { %625 = vst [vmem:[%s944_s3] sm:$0xff] %v685_v54  ;;  %633 = vst [vmem:[%s944_s3 + $0x40] sm:$0xff] %v693_v55  ;;  %v686_v58 = vpack.c.bf16 %v500_v56, %v499_v52  ;;  %v694_v59 = vpack.c.bf16 %v516_v57, %v515_v53  ;;  %v287_v60 = vpop.f32.mrb[4].mxu0  ;;  %v327_v61 = vpop.f32.mrb[4].mxu1 }
  0xfe   :  { %v469_v62 = vadd.f32 %v857_v30, %v287_v60  ;;  %v485_v63 = vadd.f32 %v857_v30, %v327_v61  ;;  %v289_v0 = vpop.f32.mrb[5].mxu0  ;;  %v329_v1 = vpop.f32.mrb[5].mxu1 }
  0xff   :  { %626 = vst [vmem:[%s944_s3 + $0x8] sm:$0xff] %v686_v58  ;;  %634 = vst [vmem:[%s944_s3 + $0x48] sm:$0xff] %v694_v59  ;;  %v470_v2 = vadd.f32 %v859_v31, %v289_v0  ;;  %v486_v3 = vadd.f32 %v859_v31, %v329_v1  ;;  %v291_v4 = vpop.f32.mrb[6].mxu0  ;;  %v331_v5 = vpop.f32.mrb[6].mxu1 }
 0x100   :  { %v501_v6 = vmax.f32 %v469_v62, 0.0  ;;  %v517_v7 = vmax.f32 %v485_v63, 0.0  ;;  %v471_v8 = vadd.f32 %v857_v30, %v291_v4  ;;  %v487_v9 = vadd.f32 %v857_v30, %v331_v5  ;;  %v293_v10 = vpop.f32.mrb[7].mxu0  ;;  %v333_v11 = vpop.f32.mrb[7].mxu1 }
 0x101   :  { %v502_v12 = vmax.f32 %v470_v2, 0.0  ;;  %v518_v13 = vmax.f32 %v486_v3, 0.0  ;;  %v472_v14 = vadd.f32 %v859_v31, %v293_v10  ;;  %v488_v15 = vadd.f32 %v859_v31, %v333_v11 }
 0x102   :  { %v503_v16 = vmax.f32 %v471_v8, 0.0  ;;  %v519_v17 = vmax.f32 %v487_v9, 0.0 }
 0x103   :  { %v687_v18 = vpack.c.bf16 %v502_v12, %v501_v6  ;;  %v695_v19 = vpack.c.bf16 %v518_v13, %v517_v7  ;;  %v504_v20 = vmax.f32 %v472_v14, 0.0  ;;  %v520_v21 = vmax.f32 %v488_v15, 0.0 }
 0x105   :  { %627 = vst [vmem:[%s944_s3 + $0x10] sm:$0xff] %v687_v18  ;;  %635 = vst [vmem:[%s944_s3 + $0x50] sm:$0xff] %v695_v19  ;;  %v688_v22 = vpack.c.bf16 %v504_v20, %v503_v16  ;;  %v696_v23 = vpack.c.bf16 %v520_v21, %v519_v17  ;;  %v297_v24 = vpop.f32.mrb[8].mxu0  ;;  %v337_v25 = vpop.f32.mrb[8].mxu1 }
 0x106   :  { %v473_v26 = vadd.f32 %v857_v30, %v297_v24  ;;  %v489_v27 = vadd.f32 %v857_v30, %v337_v25  ;;  %v299_v28 = vpop.f32.mrb[9].mxu0  ;;  %v339_v29 = vpop.f32.mrb[9].mxu1 }
 0x107   :  { %628 = vst [vmem:[%s944_s3 + $0x18] sm:$0xff] %v688_v22  ;;  %636 = vst [vmem:[%s944_s3 + $0x58] sm:$0xff] %v696_v23  ;;  %v474_v32 = vadd.f32 %v859_v31, %v299_v28  ;;  %v490_v33 = vadd.f32 %v859_v31, %v339_v29  ;;  %v301_v34 = vpop.f32.mrb[10].mxu0  ;;  %v341_v35 = vpop.f32.mrb[10].mxu1 }
 0x108   :  { %v505_v36 = vmax.f32 %v473_v26, 0.0  ;;  %v521_v37 = vmax.f32 %v489_v27, 0.0  ;;  %v475_v38 = vadd.f32 %v857_v30, %v301_v34  ;;  %v491_v39 = vadd.f32 %v857_v30, %v341_v35  ;;  %v303_v40 = vpop.f32.mrb[11].mxu0  ;;  %v343_v41 = vpop.f32.mrb[11].mxu1 }
 0x109   :  { %v506_v42 = vmax.f32 %v474_v32, 0.0  ;;  %v522_v43 = vmax.f32 %v490_v33, 0.0  ;;  %v476_v44 = vadd.f32 %v859_v31, %v303_v40  ;;  %v492_v45 = vadd.f32 %v859_v31, %v343_v41 }
 0x10a   :  { %v507_v46 = vmax.f32 %v475_v38, 0.0  ;;  %v523_v47 = vmax.f32 %v491_v39, 0.0 }
 0x10b   :  { %v689_v48 = vpack.c.bf16 %v506_v42, %v505_v36  ;;  %v697_v49 = vpack.c.bf16 %v522_v43, %v521_v37  ;;  %v508_v50 = vmax.f32 %v476_v44, 0.0  ;;  %v524_v51 = vmax.f32 %v492_v45, 0.0 }
 0x10d   :  { %629 = vst [vmem:[%s944_s3 + $0x20] sm:$0xff] %v689_v48  ;;  %637 = vst [vmem:[%s944_s3 + $0x60] sm:$0xff] %v697_v49  ;;  %v690_v52 = vpack.c.bf16 %v508_v50, %v507_v46  ;;  %v698_v53 = vpack.c.bf16 %v524_v51, %v523_v47  ;;  %v307_v54 = vpop.f32.mrb[12].mxu0  ;;  %v347_v55 = vpop.f32.mrb[12].mxu1 }
 0x10e   :  { %v477_v56 = vadd.f32 %v857_v30, %v307_v54  ;;  %v493_v57 = vadd.f32 %v857_v30, %v347_v55  ;;  %v309_v58 = vpop.f32.mrb[13].mxu0  ;;  %v349_v59 = vpop.f32.mrb[13].mxu1 }
 0x10f   :  { %630 = vst [vmem:[%s944_s3 + $0x28] sm:$0xff] %v690_v52  ;;  %638 = vst [vmem:[%s944_s3 + $0x68] sm:$0xff] %v698_v53  ;;  %v478_v60 = vadd.f32 %v859_v31, %v309_v58  ;;  %v494_v61 = vadd.f32 %v859_v31, %v349_v59  ;;  %v311_v62 = vpop.f32.mrb[14].mxu0  ;;  %v351_v63 = vpop.f32.mrb[14].mxu1 }
 0x110   :  { %v509_v0 = vmax.f32 %v477_v56, 0.0  ;;  %v525_v1 = vmax.f32 %v493_v57, 0.0  ;;  %v479_v2 = vadd.f32 %v857_v30, %v311_v62  ;;  %v495_v3 = vadd.f32 %v857_v30, %v351_v63  ;;  %v313_v4 = vpop.f32.mrb[15].mxu0  ;;  %v353_v5 = vpop.f32.mrb[15].mxu1 }
 0x111   :  { %v510_v6 = vmax.f32 %v478_v60, 0.0  ;;  %v526_v7 = vmax.f32 %v494_v61, 0.0  ;;  %v480_v8 = vadd.f32 %v859_v31, %v313_v4  ;;  %v496_v9 = vadd.f32 %v859_v31, %v353_v5 }
 0x112   :  { %v511_v10 = vmax.f32 %v479_v2, 0.0  ;;  %v527_v11 = vmax.f32 %v495_v3, 0.0 }
 0x113   :  { %v691_v12 = vpack.c.bf16 %v510_v6, %v509_v0  ;;  %v699_v13 = vpack.c.bf16 %v526_v7, %v525_v1  ;;  %v512_v14 = vmax.f32 %v480_v8, 0.0  ;;  %v528_v15 = vmax.f32 %v496_v9, 0.0 }
 0x115   :  { %631 = vst [vmem:[%s944_s3 + $0x30] sm:$0xff] %v691_v12  ;;  %639 = vst [vmem:[%s944_s3 + $0x70] sm:$0xff] %v699_v13  ;;  %v692_v30 = vpack.c.bf16 %v512_v14, %v511_v10  ;;  %v700_v16 = vpack.c.bf16 %v528_v15, %v527_v11 }
 0x117   :  { %632 = vst [vmem:[%s944_s3 + $0x38] sm:$0xff] %v692_v30  ;;  %640 = vst [vmem:[%s944_s3 + $0x78] sm:$0xff] %v700_v16 }

// kernel: encoder_module_forward.14
= control target key start
LH: loop header
LB: loop body
LE: loop exit
PB: predicated region body
PF: predicated region fallthrough
CT: control target
= control target key end

     0   :  { %v639_v1 = vmov 0   ;;  %v457_v25 = vlaneseq  ;;  %s878_s1 = inlined_call_operand.vmem [shape: bf16[128,256], index: 1, kind: input, shape index: {}]   ;;  %s879_s0 = inlined_call_operand.vmem [shape: bf16[128,128], index: 0, kind: input, shape index: {}]   ;;  %s880_s2 = inlined_call_operand.vmem [shape: f32[8,256], index: 2, kind: input, shape index: {}]   ;;  %s881_s3 = inlined_call_operand.vmem [shape: f32[128,256], index: 3, kind: output, shape index: {}]  }
   0x1   :  { %v607_v0 = vld [vmem:[%s878_s1 + $0x4] ss:$8 sps:$4 sm:$0xff]   ;;  %275 = vmatprep.mubr.bf16.mxu0 %v639_v1  ;;  %315 = vmatprep.mubr.bf16.mxu1 %v639_v1  ;;  %v609_v2 = vld [vmem:[%s878_s1] ss:$8 sps:$4 sm:$0xff]   ;;  %v610_v3 = vld [vmem:[%s878_s1 + $0x14] ss:$8 sps:$4 sm:$0xff]  }
   0x2   :  { %243 = vmatprep.subr.bf16.mxu0 %v607_v0  ;;  %589 = vmatprep.subr.bf16.mxu1 %v607_v0  ;;  %v612_v4 = vld [vmem:[%s878_s1 + $0x10] ss:$8 sps:$4 sm:$0xff]   ;;  %v613_v5 = vld [vmem:[%s878_s1 + $0x24] ss:$8 sps:$4 sm:$0xff]   ;;  %v615_v6 = vld [vmem:[%s878_s1 + $0x20] ss:$8 sps:$4 sm:$0xff]  }
   0x3   :  { %244 = vmatpush1.bf16.msra.mxu0 %v609_v2  ;;  %597 = vmatpush1.bf16.msra.mxu1 %v609_v2  ;;  %v616_v7 = vld [vmem:[%s878_s1 + $0x34] ss:$8 sps:$4 sm:$0xff]   ;;  %v618_v8 = vld [vmem:[%s878_s1 + $0x30] ss:$8 sps:$4 sm:$0xff]   ;;  %v619_v9 = vld [vmem:[%s878_s1 + $0x44] ss:$8 sps:$4 sm:$0xff]  }
   0x4   :  { %245 = vmatprep.subr.bf16.mxu0 %v610_v3  ;;  %590 = vmatprep.subr.bf16.mxu1 %v610_v3  ;;  %v621_v10 = vld [vmem:[%s878_s1 + $0x40] ss:$8 sps:$4 sm:$0xff]   ;;  %v622_v11 = vld [vmem:[%s878_s1 + $0x54] ss:$8 sps:$4 sm:$0xff]   ;;  %v624_v12 = vld [vmem:[%s878_s1 + $0x50] ss:$8 sps:$4 sm:$0xff]  }
   0x5   :  { %v625_v13 = vld [vmem:[%s878_s1 + $0x64] ss:$8 sps:$4 sm:$0xff]   ;;  %v627_v14 = vld [vmem:[%s878_s1 + $0x60] ss:$8 sps:$4 sm:$0xff]   ;;  %v628_v15 = vld [vmem:[%s878_s1 + $0x74] ss:$8 sps:$4 sm:$0xff]  }
   0x6   :  { %v630_v16 = vld [vmem:[%s878_s1 + $0x70] ss:$8 sps:$4 sm:$0xff]   ;;  %v631_v17 = vld [vmem:[%s879_s0] sm:$0xff]   ;;  %v633_v19 = vld [vmem:[%s879_s0 + $0x8] sm:$0xff]   ;;  %v458_v26 = vshrl.u32 %v457_v25, 7 }
   0x7   :  { %246 = vmatpush1.bf16.msra.mxu0 %v612_v4  ;;  %598 = vmatpush1.bf16.msra.mxu1 %v612_v4  ;;  %v632_v18 = vld [vmem:[%s879_s0 + $0x20] sm:$0xff]   ;;  %v634_v20 = vld [vmem:[%s879_s0 + $0x28] sm:$0xff]   ;;  %v635_v21 = vld [vmem:[%s879_s0 + $0x10] sm:$0xff]  }
   0x8   :  { %247 = vmatprep.subr.bf16.mxu0 %v613_v5  ;;  %591 = vmatprep.subr.bf16.mxu1 %v613_v5  ;;  %v636_v22 = vld [vmem:[%s879_s0 + $0x30] sm:$0xff]   ;;  %v637_v23 = vld [vmem:[%s879_s0 + $0x18] sm:$0xff]   ;;  %v459_v27 = vsub.s32 0, %v458_v26  ;;  %v423_v28 = vld [vmem:[%s880_s2] sm:$0xff] }
   0x9   :  { %v638_v24 = vld [vmem:[%s879_s0 + $0x38] sm:$0xff]   ;;  %v424_v29 = vld [vmem:[%s880_s2 + $0x8] sm:$0xff] }
   0xa   :  { %v746_v30 = vrot.slane %v423_v28, %v459_v27  ;;  %v748_v33 = vrot.slane %v424_v29, %v459_v27 }
   0xb   :  { %248 = vmatpush1.bf16.msra.mxu0 %v615_v6  ;;  %599 = vmatpush1.bf16.msra.mxu1 %v615_v6 }
   0xc   :  { %249 = vmatprep.subr.bf16.mxu0 %v616_v7  ;;  %592 = vmatprep.subr.bf16.mxu1 %v616_v7 }
   0xf   :  { %250 = vmatpush1.bf16.msra.mxu0 %v618_v8  ;;  %600 = vmatpush1.bf16.msra.mxu1 %v618_v8 }
  0x10   :  { %251 = vmatprep.subr.bf16.mxu0 %v619_v9  ;;  %593 = vmatprep.subr.bf16.mxu1 %v619_v9 }
  0x13   :  { %252 = vmatpush1.bf16.msra.mxu0 %v621_v10  ;;  %601 = vmatpush1.bf16.msra.mxu1 %v621_v10 }
  0x14   :  { %253 = vmatprep.subr.bf16.mxu0 %v622_v11  ;;  %594 = vmatprep.subr.bf16.mxu1 %v622_v11 }
  0x17   :  { %254 = vmatpush1.bf16.msra.mxu0 %v624_v12  ;;  %602 = vmatpush1.bf16.msra.mxu1 %v624_v12 }
  0x18   :  { %255 = vmatprep.subr.bf16.mxu0 %v625_v13  ;;  %595 = vmatprep.subr.bf16.mxu1 %v625_v13 }
  0x1b   :  { %256 = vmatpush1.bf16.msra.mxu0 %v627_v14  ;;  %603 = vmatpush1.bf16.msra.mxu1 %v627_v14 }
  0x1c   :  { %257 = vmatprep.subr.bf16.mxu0 %v628_v15  ;;  %596 = vmatprep.subr.bf16.mxu1 %v628_v15 }
  0x1f   :  { %258 = vmatpush1.bf16.msra.mxu0 %v630_v16  ;;  %604 = vmatpush1.bf16.msra.mxu1 %v630_v16 }
  0x22   :  { %276 = vmatmul.mubr.bf16.vlgmr.msra.gmra.mrb[0].mxu0 %v631_v17  ;;  %316 = vmatmul.mubr.bf16.vlgmr.msra.gmra.mrb[0].mxu1 %v632_v18 }
  0x23   :  { %285 = vmatprep.mubr.bf16.mxu0 %v639_v1  ;;  %325 = vmatprep.mubr.bf16.mxu1 %v639_v1 }
  0x2a   :  { %286 = vmatmul.mubr.bf16.gmra.mrb[4].mxu0 %v633_v19  ;;  %326 = vmatmul.mubr.bf16.gmra.mrb[4].mxu1 %v634_v20 }
  0x2b   :  { %295 = vmatprep.mubr.bf16.mxu0 %v639_v1  ;;  %335 = vmatprep.mubr.bf16.mxu1 %v639_v1 }
  0x32   :  { %296 = vmatmul.mubr.bf16.gmra.mrb[8].mxu0 %v635_v21  ;;  %336 = vmatmul.mubr.bf16.gmra.mrb[8].mxu1 %v636_v22 }
  0x33   :  { %305 = vmatprep.mubr.bf16.mxu0 %v639_v1  ;;  %345 = vmatprep.mubr.bf16.mxu1 %v639_v1 }
  0x3a   :  { %306 = vmatmul.mubr.bf16.gmra.mrb[12].mxu0 %v637_v23  ;;  %346 = vmatmul.mubr.bf16.gmra.mrb[12].mxu1 %v638_v24 }
  0xf5   :  { %v277_v31 = vpop.f32.mrb[0].mxu0  ;;  %v317_v32 = vpop.f32.mrb[0].mxu1 }
  0xf6   :  { %v279_v34 = vpop.f32.mrb[1].mxu0  ;;  %v319_v35 = vpop.f32.mrb[1].mxu1  ;;  %v465_v38 = vadd.f32 %v746_v30, %v277_v31  ;;  %v481_v39 = vadd.f32 %v746_v30, %v317_v32 }
  0xf7   :  { %v281_v36 = vpop.f32.mrb[2].mxu0  ;;  %v321_v37 = vpop.f32.mrb[2].mxu1  ;;  %v466_v42 = vadd.f32 %v748_v33, %v279_v34  ;;  %v482_v43 = vadd.f32 %v748_v33, %v319_v35 }
  0xf8   :  { %v283_v40 = vpop.f32.mrb[3].mxu0  ;;  %v323_v41 = vpop.f32.mrb[3].mxu1  ;;  %v497_v44 = vmax.f32 %v465_v38, 0.0  ;;  %v513_v45 = vmax.f32 %v481_v39, 0.0  ;;  %v467_v46 = vadd.f32 %v746_v30, %v281_v36  ;;  %v483_v47 = vadd.f32 %v746_v30, %v321_v37 }
  0xf9   :  { %v498_v48 = vmax.f32 %v466_v42, 0.0  ;;  %v514_v49 = vmax.f32 %v482_v43, 0.0  ;;  %v468_v50 = vadd.f32 %v748_v33, %v283_v40  ;;  %v484_v51 = vadd.f32 %v748_v33, %v323_v41 }
  0xfa   :  { %529 = vst [vmem:[%s881_s3] sm:$0xff] %v497_v44  ;;  %545 = vst [vmem:[%s881_s3 + $0x80] sm:$0xff] %v513_v45  ;;  %v499_v52 = vmax.f32 %v467_v46, 0.0  ;;  %v515_v53 = vmax.f32 %v483_v47, 0.0 }
  0xfb   :  { %530 = vst [vmem:[%s881_s3 + $0x8] sm:$0xff] %v498_v48  ;;  %546 = vst [vmem:[%s881_s3 + $0x88] sm:$0xff] %v514_v49  ;;  %v500_v54 = vmax.f32 %v468_v50, 0.0  ;;  %v516_v55 = vmax.f32 %v484_v51, 0.0 }
  0xfc   :  { %531 = vst [vmem:[%s881_s3 + $0x10] sm:$0xff] %v499_v52  ;;  %547 = vst [vmem:[%s881_s3 + $0x90] sm:$0xff] %v515_v53 }
  0xfd   :  { %v287_v56 = vpop.f32.mrb[4].mxu0  ;;  %v327_v57 = vpop.f32.mrb[4].mxu1  ;;  %532 = vst [vmem:[%s881_s3 + $0x18] sm:$0xff] %v500_v54  ;;  %548 = vst [vmem:[%s881_s3 + $0x98] sm:$0xff] %v516_v55 }
  0xfe   :  { %v289_v58 = vpop.f32.mrb[5].mxu0  ;;  %v329_v59 = vpop.f32.mrb[5].mxu1  ;;  %v469_v62 = vadd.f32 %v746_v30, %v287_v56  ;;  %v485_v63 = vadd.f32 %v746_v30, %v327_v57 }
  0xff   :  { %v291_v60 = vpop.f32.mrb[6].mxu0  ;;  %v331_v61 = vpop.f32.mrb[6].mxu1  ;;  %v470_v2 = vadd.f32 %v748_v33, %v289_v58  ;;  %v486_v3 = vadd.f32 %v748_v33, %v329_v59 }
 0x100   :  { %v293_v0 = vpop.f32.mrb[7].mxu0  ;;  %v333_v1 = vpop.f32.mrb[7].mxu1  ;;  %v501_v4 = vmax.f32 %v469_v62, 0.0  ;;  %v517_v5 = vmax.f32 %v485_v63, 0.0  ;;  %v471_v6 = vadd.f32 %v746_v30, %v291_v60  ;;  %v487_v7 = vadd.f32 %v746_v30, %v331_v61 }
 0x101   :  { %v502_v8 = vmax.f32 %v470_v2, 0.0  ;;  %v518_v9 = vmax.f32 %v486_v3, 0.0  ;;  %v472_v10 = vadd.f32 %v748_v33, %v293_v0  ;;  %v488_v11 = vadd.f32 %v748_v33, %v333_v1 }
 0x102   :  { %533 = vst [vmem:[%s881_s3 + $0x20] sm:$0xff] %v501_v4  ;;  %549 = vst [vmem:[%s881_s3 + $0xa0] sm:$0xff] %v517_v5  ;;  %v503_v12 = vmax.f32 %v471_v6, 0.0  ;;  %v519_v13 = vmax.f32 %v487_v7, 0.0 }
 0x103   :  { %534 = vst [vmem:[%s881_s3 + $0x28] sm:$0xff] %v502_v8  ;;  %550 = vst [vmem:[%s881_s3 + $0xa8] sm:$0xff] %v518_v9  ;;  %v504_v14 = vmax.f32 %v472_v10, 0.0  ;;  %v520_v15 = vmax.f32 %v488_v11, 0.0 }
 0x104   :  { %535 = vst [vmem:[%s881_s3 + $0x30] sm:$0xff] %v503_v12  ;;  %551 = vst [vmem:[%s881_s3 + $0xb0] sm:$0xff] %v519_v13 }
 0x105   :  { %v297_v16 = vpop.f32.mrb[8].mxu0  ;;  %v337_v17 = vpop.f32.mrb[8].mxu1  ;;  %536 = vst [vmem:[%s881_s3 + $0x38] sm:$0xff] %v504_v14  ;;  %552 = vst [vmem:[%s881_s3 + $0xb8] sm:$0xff] %v520_v15 }
 0x106   :  { %v299_v18 = vpop.f32.mrb[9].mxu0  ;;  %v339_v19 = vpop.f32.mrb[9].mxu1  ;;  %v473_v22 = vadd.f32 %v746_v30, %v297_v16  ;;  %v489_v23 = vadd.f32 %v746_v30, %v337_v17 }
 0x107   :  { %v301_v20 = vpop.f32.mrb[10].mxu0  ;;  %v341_v21 = vpop.f32.mrb[10].mxu1  ;;  %v474_v26 = vadd.f32 %v748_v33, %v299_v18  ;;  %v490_v27 = vadd.f32 %v748_v33, %v339_v19 }
 0x108   :  { %v303_v24 = vpop.f32.mrb[11].mxu0  ;;  %v343_v25 = vpop.f32.mrb[11].mxu1  ;;  %v505_v28 = vmax.f32 %v473_v22, 0.0  ;;  %v521_v29 = vmax.f32 %v489_v23, 0.0  ;;  %v475_v31 = vadd.f32 %v746_v30, %v301_v20  ;;  %v491_v32 = vadd.f32 %v746_v30, %v341_v21 }
 0x109   :  { %v506_v34 = vmax.f32 %v474_v26, 0.0  ;;  %v522_v35 = vmax.f32 %v490_v27, 0.0  ;;  %v476_v36 = vadd.f32 %v748_v33, %v303_v24  ;;  %v492_v37 = vadd.f32 %v748_v33, %v343_v25 }
 0x10a   :  { %537 = vst [vmem:[%s881_s3 + $0x40] sm:$0xff] %v505_v28  ;;  %553 = vst [vmem:[%s881_s3 + $0xc0] sm:$0xff] %v521_v29  ;;  %v507_v38 = vmax.f32 %v475_v31, 0.0  ;;  %v523_v39 = vmax.f32 %v491_v32, 0.0 }
 0x10b   :  { %538 = vst [vmem:[%s881_s3 + $0x48] sm:$0xff] %v506_v34  ;;  %554 = vst [vmem:[%s881_s3 + $0xc8] sm:$0xff] %v522_v35  ;;  %v508_v40 = vmax.f32 %v476_v36, 0.0  ;;  %v524_v41 = vmax.f32 %v492_v37, 0.0 }
 0x10c   :  { %539 = vst [vmem:[%s881_s3 + $0x50] sm:$0xff] %v507_v38  ;;  %555 = vst [vmem:[%s881_s3 + $0xd0] sm:$0xff] %v523_v39 }
 0x10d   :  { %v307_v42 = vpop.f32.mrb[12].mxu0  ;;  %v347_v43 = vpop.f32.mrb[12].mxu1  ;;  %540 = vst [vmem:[%s881_s3 + $0x58] sm:$0xff] %v508_v40  ;;  %556 = vst [vmem:[%s881_s3 + $0xd8] sm:$0xff] %v524_v41 }
 0x10e   :  { %v309_v44 = vpop.f32.mrb[13].mxu0  ;;  %v349_v45 = vpop.f32.mrb[13].mxu1  ;;  %v477_v48 = vadd.f32 %v746_v30, %v307_v42  ;;  %v493_v49 = vadd.f32 %v746_v30, %v347_v43 }
 0x10f   :  { %v311_v46 = vpop.f32.mrb[14].mxu0  ;;  %v351_v47 = vpop.f32.mrb[14].mxu1  ;;  %v478_v52 = vadd.f32 %v748_v33, %v309_v44  ;;  %v494_v53 = vadd.f32 %v748_v33, %v349_v45 }
 0x110   :  { %v313_v50 = vpop.f32.mrb[15].mxu0  ;;  %v353_v51 = vpop.f32.mrb[15].mxu1  ;;  %v509_v54 = vmax.f32 %v477_v48, 0.0  ;;  %v525_v55 = vmax.f32 %v493_v49, 0.0  ;;  %v479_v56 = vadd.f32 %v746_v30, %v311_v46  ;;  %v495_v57 = vadd.f32 %v746_v30, %v351_v47 }
 0x111   :  { %v510_v58 = vmax.f32 %v478_v52, 0.0  ;;  %v526_v59 = vmax.f32 %v494_v53, 0.0  ;;  %v480_v60 = vadd.f32 %v748_v33, %v313_v50  ;;  %v496_v61 = vadd.f32 %v748_v33, %v353_v51 }
 0x112   :  { %541 = vst [vmem:[%s881_s3 + $0x60] sm:$0xff] %v509_v54  ;;  %557 = vst [vmem:[%s881_s3 + $0xe0] sm:$0xff] %v525_v55  ;;  %v511_v62 = vmax.f32 %v479_v56, 0.0  ;;  %v527_v63 = vmax.f32 %v495_v57, 0.0 }
 0x113   :  { %542 = vst [vmem:[%s881_s3 + $0x68] sm:$0xff] %v510_v58  ;;  %558 = vst [vmem:[%s881_s3 + $0xe8] sm:$0xff] %v526_v59  ;;  %v512_v30 = vmax.f32 %v480_v60, 0.0  ;;  %v528_v33 = vmax.f32 %v496_v61, 0.0 }
 0x114   :  { %543 = vst [vmem:[%s881_s3 + $0x70] sm:$0xff] %v511_v62  ;;  %559 = vst [vmem:[%s881_s3 + $0xf0] sm:$0xff] %v527_v63 }
 0x115   :  { %544 = vst [vmem:[%s881_s3 + $0x78] sm:$0xff] %v512_v30  ;;  %560 = vst [vmem:[%s881_s3 + $0xf8] sm:$0xff] %v528_v33 }

// kernel: encoder_module_forward.12
= control target key start
LH: loop header
LB: loop body
LE: loop exit
PB: predicated region body
PF: predicated region fallthrough
CT: control target
= control target key end

     0   :  { %s1086_s1 = inlined_call_operand.vmem [shape: bf16[256,256], index: 1, kind: input, shape index: {}]   ;;  %s1087_s0 = inlined_call_operand.vmem [shape: bf16[128,256], index: 0, kind: input, shape index: {}]   ;;  %s1088_s2 = inlined_call_operand.vmem [shape: bf16[128,256], index: 2, kind: output, shape index: {}]  }
   0x1   :  { %v807_v0 = vld [vmem:[%s1086_s1 + $0x4] ss:$8 sps:$4 sm:$0xff]   ;;  %v809_v1 = vld [vmem:[%s1086_s1] ss:$8 sps:$4 sm:$0xff]   ;;  %v810_v2 = vld [vmem:[%s1086_s1 + $0x14] ss:$8 sps:$4 sm:$0xff]  }
   0x2   :  { %367 = vmatprep.subr.bf16.mxu0 %v807_v0  ;;  %775 = vmatprep.subr.bf16.mxu1 %v807_v0  ;;  %v812_v3 = vld [vmem:[%s1086_s1 + $0x10] ss:$8 sps:$4 sm:$0xff]   ;;  %v813_v4 = vld [vmem:[%s1086_s1 + $0x24] ss:$8 sps:$4 sm:$0xff]   ;;  %v815_v5 = vld [vmem:[%s1086_s1 + $0x20] ss:$8 sps:$4 sm:$0xff]  }
   0x3   :  { %368 = vmatpush1.bf16.msra.mxu0 %v809_v1  ;;  %791 = vmatpush1.bf16.msra.mxu1 %v809_v1  ;;  %v816_v6 = vld [vmem:[%s1086_s1 + $0x34] ss:$8 sps:$4 sm:$0xff]   ;;  %v818_v7 = vld [vmem:[%s1086_s1 + $0x30] ss:$8 sps:$4 sm:$0xff]   ;;  %v819_v8 = vld [vmem:[%s1086_s1 + $0x44] ss:$8 sps:$4 sm:$0xff]  }
   0x4   :  { %369 = vmatprep.subr.bf16.mxu0 %v810_v2  ;;  %776 = vmatprep.subr.bf16.mxu1 %v810_v2  ;;  %v821_v9 = vld [vmem:[%s1086_s1 + $0x40] ss:$8 sps:$4 sm:$0xff]   ;;  %v822_v10 = vld [vmem:[%s1086_s1 + $0x54] ss:$8 sps:$4 sm:$0xff]   ;;  %v824_v11 = vld [vmem:[%s1086_s1 + $0x50] ss:$8 sps:$4 sm:$0xff]  }
   0x5   :  { %v825_v12 = vld [vmem:[%s1086_s1 + $0x64] ss:$8 sps:$4 sm:$0xff]   ;;  %v827_v14 = vld [vmem:[%s1086_s1 + $0x60] ss:$8 sps:$4 sm:$0xff]   ;;  %v828_v16 = vld [vmem:[%s1086_s1 + $0x74] ss:$8 sps:$4 sm:$0xff]  }
   0x6   :  { %v857_v13 = vld [vmem:[%s1087_s0 + $0x4] ss:$8 sps:$4 sm:$0xff]   ;;  %v830_v17 = vld [vmem:[%s1086_s1 + $0x70] ss:$8 sps:$4 sm:$0xff]   ;;  %v833_v19 = vld [vmem:[%s1086_s1 + $0x80] ss:$8 sps:$4 sm:$0xff]  }
   0x7   :  { %370 = vmatpush1.bf16.msra.mxu0 %v812_v3  ;;  %792 = vmatpush1.bf16.msra.mxu1 %v812_v3  ;;  %v860_v15 = vld [vmem:[%s1087_s0 + $0x44] ss:$8 sps:$4 sm:$0xff]   ;;  %v834_v20 = vld [vmem:[%s1086_s1 + $0x94] ss:$8 sps:$4 sm:$0xff]   ;;  %v836_v21 = vld [vmem:[%s1086_s1 + $0x90] ss:$8 sps:$4 sm:$0xff]  }
   0x8   :  { %371 = vmatprep.subr.bf16.mxu0 %v813_v4  ;;  %777 = vmatprep.subr.bf16.mxu1 %v813_v4  ;;  %v831_v18 = vld [vmem:[%s1086_s1 + $0x84] ss:$8 sps:$4 sm:$0xff]   ;;  %v839_v23 = vld [vmem:[%s1086_s1 + $0xa0] ss:$8 sps:$4 sm:$0xff]   ;;  %v840_v24 = vld [vmem:[%s1086_s1 + $0xb4] ss:$8 sps:$4 sm:$0xff]  }
   0x9   :  { %399 = vmatprep.mubr.bf16.mxu0 %v857_v13  ;;  %439 = vmatprep.mubr.bf16.mxu1 %v860_v15  ;;  %v837_v22 = vld [vmem:[%s1086_s1 + $0xa4] ss:$8 sps:$4 sm:$0xff]   ;;  %v842_v25 = vld [vmem:[%s1086_s1 + $0xb0] ss:$8 sps:$4 sm:$0xff]   ;;  %v845_v27 = vld [vmem:[%s1086_s1 + $0xc0] ss:$8 sps:$4 sm:$0xff]  }
   0xa   :  { %v843_v26 = vld [vmem:[%s1086_s1 + $0xc4] ss:$8 sps:$4 sm:$0xff]   ;;  %v846_v28 = vld [vmem:[%s1086_s1 + $0xd4] ss:$8 sps:$4 sm:$0xff]   ;;  %v848_v29 = vld [vmem:[%s1086_s1 + $0xd0] ss:$8 sps:$4 sm:$0xff]  }
   0xb   :  { %372 = vmatpush1.bf16.msra.mxu0 %v815_v5  ;;  %793 = vmatpush1.bf16.msra.mxu1 %v815_v5  ;;  %v849_v30 = vld [vmem:[%s1086_s1 + $0xe4] ss:$8 sps:$4 sm:$0xff]   ;;  %v851_v31 = vld [vmem:[%s1086_s1 + $0xe0] ss:$8 sps:$4 sm:$0xff]   ;;  %v852_v32 = vld [vmem:[%s1086_s1 + $0xf4] ss:$8 sps:$4 sm:$0xff]  }
   0xc   :  { %373 = vmatprep.subr.bf16.mxu0 %v816_v6  ;;  %778 = vmatprep.subr.bf16.mxu1 %v816_v6  ;;  %v854_v33 = vld [vmem:[%s1086_s1 + $0xf0] ss:$8 sps:$4 sm:$0xff]   ;;  %v855_v34 = vld [vmem:[%s1087_s0] ss:$8 sps:$4 sm:$0xff]   ;;  %v861_v36 = vld [vmem:[%s1087_s0 + $0x14] ss:$8 sps:$4 sm:$0xff]  }
   0xd   :  { %v858_v35 = vld [vmem:[%s1087_s0 + $0x40] ss:$8 sps:$4 sm:$0xff]   ;;  %v863_v37 = vld [vmem:[%s1087_s0 + $0x54] ss:$8 sps:$4 sm:$0xff]   ;;  %v865_v38 = vld [vmem:[%s1087_s0 + $0x10] ss:$8 sps:$4 sm:$0xff]  }
   0xe   :  { %v866_v39 = vld [vmem:[%s1087_s0 + $0x50] ss:$8 sps:$4 sm:$0xff]   ;;  %v867_v40 = vld [vmem:[%s1087_s0 + $0x24] ss:$8 sps:$4 sm:$0xff]   ;;  %v871_v42 = vld [vmem:[%s1087_s0 + $0x20] ss:$8 sps:$4 sm:$0xff]  }
   0xf   :  { %374 = vmatpush1.bf16.msra.mxu0 %v818_v7  ;;  %794 = vmatpush1.bf16.msra.mxu1 %v818_v7  ;;  %v869_v41 = vld [vmem:[%s1087_s0 + $0x64] ss:$8 sps:$4 sm:$0xff]   ;;  %v872_v43 = vld [vmem:[%s1087_s0 + $0x60] ss:$8 sps:$4 sm:$0xff]   ;;  %v873_v44 = vld [vmem:[%s1087_s0 + $0x34] ss:$8 sps:$4 sm:$0xff]  }
  0x10   :  { %375 = vmatprep.subr.bf16.mxu0 %v819_v8  ;;  %779 = vmatprep.subr.bf16.mxu1 %v819_v8  ;;  %v875_v45 = vld [vmem:[%s1087_s0 + $0x74] ss:$8 sps:$4 sm:$0xff]   ;;  %v877_v46 = vld [vmem:[%s1087_s0 + $0x30] ss:$8 sps:$4 sm:$0xff]  }
  0x11   :  { %v878_v47 = vld [vmem:[%s1087_s0 + $0x70] ss:$8 sps:$4 sm:$0xff]  }
  0x13   :  { %376 = vmatpush1.bf16.msra.mxu0 %v821_v9  ;;  %795 = vmatpush1.bf16.msra.mxu1 %v821_v9 }
  0x14   :  { %377 = vmatprep.subr.bf16.mxu0 %v822_v10  ;;  %780 = vmatprep.subr.bf16.mxu1 %v822_v10 }
  0x17   :  { %378 = vmatpush1.bf16.msra.mxu0 %v824_v11  ;;  %796 = vmatpush1.bf16.msra.mxu1 %v824_v11 }
  0x18   :  { %379 = vmatprep.subr.bf16.mxu0 %v825_v12  ;;  %781 = vmatprep.subr.bf16.mxu1 %v825_v12 }
  0x1b   :  { %380 = vmatpush1.bf16.msra.mxu0 %v827_v14  ;;  %797 = vmatpush1.bf16.msra.mxu1 %v827_v14 }
  0x1c   :  { %381 = vmatprep.subr.bf16.mxu0 %v828_v16  ;;  %782 = vmatprep.subr.bf16.mxu1 %v828_v16 }
  0x1f   :  { %382 = vmatpush1.bf16.msra.mxu0 %v830_v17  ;;  %798 = vmatpush1.bf16.msra.mxu1 %v830_v17 }
  0x20   :  { %383 = vmatprep.subr.bf16.mxu0 %v831_v18  ;;  %783 = vmatprep.subr.bf16.mxu1 %v831_v18 }
  0x23   :  { %384 = vmatpush1.bf16.msra.mxu0 %v833_v19  ;;  %799 = vmatpush1.bf16.msra.mxu1 %v833_v19 }
  0x24   :  { %385 = vmatprep.subr.bf16.mxu0 %v834_v20  ;;  %784 = vmatprep.subr.bf16.mxu1 %v834_v20 }
  0x27   :  { %386 = vmatpush1.bf16.msra.mxu0 %v836_v21  ;;  %800 = vmatpush1.bf16.msra.mxu1 %v836_v21 }
  0x28   :  { %387 = vmatprep.subr.bf16.mxu0 %v837_v22  ;;  %785 = vmatprep.subr.bf16.mxu1 %v837_v22 }
  0x2b   :  { %388 = vmatpush1.bf16.msra.mxu0 %v839_v23  ;;  %801 = vmatpush1.bf16.msra.mxu1 %v839_v23 }
  0x2c   :  { %389 = vmatprep.subr.bf16.mxu0 %v840_v24  ;;  %786 = vmatprep.subr.bf16.mxu1 %v840_v24 }
  0x2f   :  { %390 = vmatpush1.bf16.msra.mxu0 %v842_v25  ;;  %802 = vmatpush1.bf16.msra.mxu1 %v842_v25 }
  0x30   :  { %391 = vmatprep.subr.bf16.mxu0 %v843_v26  ;;  %787 = vmatprep.subr.bf16.mxu1 %v843_v26 }
  0x33   :  { %392 = vmatpush1.bf16.msra.mxu0 %v845_v27  ;;  %803 = vmatpush1.bf16.msra.mxu1 %v845_v27 }
  0x34   :  { %393 = vmatprep.subr.bf16.mxu0 %v846_v28  ;;  %788 = vmatprep.subr.bf16.mxu1 %v846_v28 }
  0x37   :  { %394 = vmatpush1.bf16.msra.mxu0 %v848_v29  ;;  %804 = vmatpush1.bf16.msra.mxu1 %v848_v29 }
  0x38   :  { %395 = vmatprep.subr.bf16.mxu0 %v849_v30  ;;  %789 = vmatprep.subr.bf16.mxu1 %v849_v30 }
  0x3b   :  { %396 = vmatpush1.bf16.msra.mxu0 %v851_v31  ;;  %805 = vmatpush1.bf16.msra.mxu1 %v851_v31 }
  0x3c   :  { %397 = vmatprep.subr.bf16.mxu0 %v852_v32  ;;  %790 = vmatprep.subr.bf16.mxu1 %v852_v32 }
  0x3f   :  { %398 = vmatpush1.bf16.msra.mxu0 %v854_v33  ;;  %806 = vmatpush1.bf16.msra.mxu1 %v854_v33 }
  0x42   :  { %400 = vmatmul.mubr.bf16.vlgmr.msra.gmra.mrb[0].mxu0 %v855_v34  ;;  %440 = vmatmul.mubr.bf16.vlgmr.msra.gmra.mrb[0].mxu1 %v858_v35 }
  0x43   :  { %409 = vmatprep.mubr.bf16.mxu0 %v861_v36  ;;  %449 = vmatprep.mubr.bf16.mxu1 %v863_v37 }
  0x4a   :  { %410 = vmatmul.mubr.bf16.gmra.mrb[4].mxu0 %v865_v38  ;;  %450 = vmatmul.mubr.bf16.gmra.mrb[4].mxu1 %v866_v39 }
  0x4b   :  { %419 = vmatprep.mubr.bf16.mxu0 %v867_v40  ;;  %459 = vmatprep.mubr.bf16.mxu1 %v869_v41 }
  0x52   :  { %420 = vmatmul.mubr.bf16.gmra.mrb[8].mxu0 %v871_v42  ;;  %460 = vmatmul.mubr.bf16.gmra.mrb[8].mxu1 %v872_v43 }
  0x53   :  { %429 = vmatprep.mubr.bf16.mxu0 %v873_v44  ;;  %469 = vmatprep.mubr.bf16.mxu1 %v875_v45 }
  0x5a   :  { %430 = vmatmul.mubr.bf16.gmra.mrb[12].mxu0 %v877_v46  ;;  %470 = vmatmul.mubr.bf16.gmra.mrb[12].mxu1 %v878_v47 }
 0x115   :  { %v401_v48 = vpop.f32.mrb[0].mxu0  ;;  %v441_v49 = vpop.f32.mrb[0].mxu1 }
 0x116   :  { %v403_v50 = vpop.f32.mrb[1].mxu0  ;;  %v443_v51 = vpop.f32.mrb[1].mxu1 }
 0x117   :  { %v759_v52 = vpack.c.bf16 %v403_v50, %v401_v48  ;;  %v767_v53 = vpack.c.bf16 %v443_v51, %v441_v49  ;;  %v405_v54 = vpop.f32.mrb[2].mxu0  ;;  %v445_v55 = vpop.f32.mrb[2].mxu1 }
 0x118   :  { %v407_v56 = vpop.f32.mrb[3].mxu0  ;;  %v447_v57 = vpop.f32.mrb[3].mxu1 }
 0x119   :  { %675 = vst [vmem:[%s1088_s2] sm:$0xff] %v759_v52  ;;  %683 = vst [vmem:[%s1088_s2 + $0x40] sm:$0xff] %v767_v53  ;;  %v760_v58 = vpack.c.bf16 %v407_v56, %v405_v54  ;;  %v768_v59 = vpack.c.bf16 %v447_v57, %v445_v55 }
 0x11b   :  { %676 = vst [vmem:[%s1088_s2 + $0x8] sm:$0xff] %v760_v58  ;;  %684 = vst [vmem:[%s1088_s2 + $0x48] sm:$0xff] %v768_v59 }
 0x11d   :  { %v411_v60 = vpop.f32.mrb[4].mxu0  ;;  %v451_v61 = vpop.f32.mrb[4].mxu1 }
 0x11e   :  { %v413_v62 = vpop.f32.mrb[5].mxu0  ;;  %v453_v63 = vpop.f32.mrb[5].mxu1 }
 0x11f   :  { %v761_v0 = vpack.c.bf16 %v413_v62, %v411_v60  ;;  %v769_v1 = vpack.c.bf16 %v453_v63, %v451_v61  ;;  %v415_v2 = vpop.f32.mrb[6].mxu0  ;;  %v455_v3 = vpop.f32.mrb[6].mxu1 }
 0x120   :  { %v417_v4 = vpop.f32.mrb[7].mxu0  ;;  %v457_v5 = vpop.f32.mrb[7].mxu1 }
 0x121   :  { %677 = vst [vmem:[%s1088_s2 + $0x10] sm:$0xff] %v761_v0  ;;  %685 = vst [vmem:[%s1088_s2 + $0x50] sm:$0xff] %v769_v1  ;;  %v762_v6 = vpack.c.bf16 %v417_v4, %v415_v2  ;;  %v770_v7 = vpack.c.bf16 %v457_v5, %v455_v3 }
 0x123   :  { %678 = vst [vmem:[%s1088_s2 + $0x18] sm:$0xff] %v762_v6  ;;  %686 = vst [vmem:[%s1088_s2 + $0x58] sm:$0xff] %v770_v7 }
 0x125   :  { %v421_v8 = vpop.f32.mrb[8].mxu0  ;;  %v461_v9 = vpop.f32.mrb[8].mxu1 }
 0x126   :  { %v423_v10 = vpop.f32.mrb[9].mxu0  ;;  %v463_v11 = vpop.f32.mrb[9].mxu1 }
 0x127   :  { %v763_v12 = vpack.c.bf16 %v423_v10, %v421_v8  ;;  %v771_v13 = vpack.c.bf16 %v463_v11, %v461_v9  ;;  %v425_v14 = vpop.f32.mrb[10].mxu0  ;;  %v465_v15 = vpop.f32.mrb[10].mxu1 }
 0x128   :  { %v427_v16 = vpop.f32.mrb[11].mxu0  ;;  %v467_v17 = vpop.f32.mrb[11].mxu1 }
 0x129   :  { %679 = vst [vmem:[%s1088_s2 + $0x20] sm:$0xff] %v763_v12  ;;  %687 = vst [vmem:[%s1088_s2 + $0x60] sm:$0xff] %v771_v13  ;;  %v764_v18 = vpack.c.bf16 %v427_v16, %v425_v14  ;;  %v772_v19 = vpack.c.bf16 %v467_v17, %v465_v15 }
 0x12b   :  { %680 = vst [vmem:[%s1088_s2 + $0x28] sm:$0xff] %v764_v18  ;;  %688 = vst [vmem:[%s1088_s2 + $0x68] sm:$0xff] %v772_v19 }
 0x12d   :  { %v431_v20 = vpop.f32.mrb[12].mxu0  ;;  %v471_v21 = vpop.f32.mrb[12].mxu1 }
 0x12e   :  { %v433_v22 = vpop.f32.mrb[13].mxu0  ;;  %v473_v23 = vpop.f32.mrb[13].mxu1 }
 0x12f   :  { %v765_v24 = vpack.c.bf16 %v433_v22, %v431_v20  ;;  %v773_v25 = vpack.c.bf16 %v473_v23, %v471_v21  ;;  %v435_v26 = vpop.f32.mrb[14].mxu0  ;;  %v475_v27 = vpop.f32.mrb[14].mxu1 }
 0x130   :  { %v437_v28 = vpop.f32.mrb[15].mxu0  ;;  %v477_v29 = vpop.f32.mrb[15].mxu1 }
 0x131   :  { %681 = vst [vmem:[%s1088_s2 + $0x30] sm:$0xff] %v765_v24  ;;  %689 = vst [vmem:[%s1088_s2 + $0x70] sm:$0xff] %v773_v25  ;;  %v766_v30 = vpack.c.bf16 %v437_v28, %v435_v26  ;;  %v774_v31 = vpack.c.bf16 %v477_v29, %v475_v27 }
 0x133   :  { %682 = vst [vmem:[%s1088_s2 + $0x38] sm:$0xff] %v766_v30  ;;  %690 = vst [vmem:[%s1088_s2 + $0x78] sm:$0xff] %v774_v31 }

// kernel: encoder_module_forward.16
= control target key start
LH: loop header
LB: loop body
LE: loop exit
PB: predicated region body
PF: predicated region fallthrough
CT: control target
= control target key end

     0   :  { %v208_v1 = vmov 0   ;;  %s281_s1 = inlined_call_operand.vmem [shape: bf16[128,256], index: 1, kind: input, shape index: {}]   ;;  %s282_s0 = inlined_call_operand.vmem [shape: bf16[8,128], index: 0, kind: input, shape index: {}]   ;;  %s283_s2 = inlined_call_operand.vmem [shape: f32[8,256], index: 2, kind: output, shape index: {}]  }
   0x1   :  { %v184_v0 = vld [vmem:[%s281_s1 + $0x4] ss:$8 sps:$4 sm:$0xff]   ;;  %149 = vmatprep.mubr.bf16.mxu0 %v208_v1  ;;  %v186_v2 = vld [vmem:[%s281_s1] ss:$8 sps:$4 sm:$0xff]   ;;  %v187_v3 = vld [vmem:[%s281_s1 + $0x14] ss:$8 sps:$4 sm:$0xff]  }
   0x2   :  { %117 = vmatprep.subr.bf16.mxu0 %v184_v0  ;;  %v189_v4 = vld [vmem:[%s281_s1 + $0x10] ss:$8 sps:$4 sm:$0xff]   ;;  %v190_v5 = vld [vmem:[%s281_s1 + $0x24] ss:$8 sps:$4 sm:$0xff]   ;;  %v192_v6 = vld [vmem:[%s281_s1 + $0x20] ss:$8 sps:$4 sm:$0xff]  }
   0x3   :  { %118 = vmatpush1.bf16.msra.mxu0 %v186_v2  ;;  %v193_v7 = vld [vmem:[%s281_s1 + $0x34] ss:$8 sps:$4 sm:$0xff]   ;;  %v195_v8 = vld [vmem:[%s281_s1 + $0x30] ss:$8 sps:$4 sm:$0xff]   ;;  %v196_v9 = vld [vmem:[%s281_s1 + $0x44] ss:$8 sps:$4 sm:$0xff]  }
   0x4   :  { %119 = vmatprep.subr.bf16.mxu0 %v187_v3  ;;  %v198_v10 = vld [vmem:[%s281_s1 + $0x40] ss:$8 sps:$4 sm:$0xff]   ;;  %v199_v11 = vld [vmem:[%s281_s1 + $0x54] ss:$8 sps:$4 sm:$0xff]   ;;  %v201_v12 = vld [vmem:[%s281_s1 + $0x50] ss:$8 sps:$4 sm:$0xff]  }
   0x5   :  { %v202_v13 = vld [vmem:[%s281_s1 + $0x64] ss:$8 sps:$4 sm:$0xff]   ;;  %v204_v14 = vld [vmem:[%s281_s1 + $0x60] ss:$8 sps:$4 sm:$0xff]   ;;  %v205_v15 = vld [vmem:[%s281_s1 + $0x74] ss:$8 sps:$4 sm:$0xff]  }
   0x6   :  { %v207_v16 = vld [vmem:[%s281_s1 + $0x70] ss:$8 sps:$4 sm:$0xff]   ;;  %v20_v17 = vld [vmem:[%s282_s0] sm:$0xf] }
   0x7   :  { %120 = vmatpush1.bf16.msra.mxu0 %v189_v4 }
   0x8   :  { %121 = vmatprep.subr.bf16.mxu0 %v190_v5 }
   0xb   :  { %122 = vmatpush1.bf16.msra.mxu0 %v192_v6 }
   0xc   :  { %123 = vmatprep.subr.bf16.mxu0 %v193_v7 }
   0xf   :  { %124 = vmatpush1.bf16.msra.mxu0 %v195_v8 }
  0x10   :  { %125 = vmatprep.subr.bf16.mxu0 %v196_v9 }
  0x13   :  { %126 = vmatpush1.bf16.msra.mxu0 %v198_v10 }
  0x14   :  { %127 = vmatprep.subr.bf16.mxu0 %v199_v11 }
  0x17   :  { %128 = vmatpush1.bf16.msra.mxu0 %v201_v12 }
  0x18   :  { %129 = vmatprep.subr.bf16.mxu0 %v202_v13 }
  0x1b   :  { %130 = vmatpush1.bf16.msra.mxu0 %v204_v14 }
  0x1c   :  { %131 = vmatprep.subr.bf16.mxu0 %v205_v15 }
  0x1f   :  { %132 = vmatpush1.bf16.msra.mxu0 %v207_v16 }
  0x22   :  { %150 = vmatmul.mubr.bf16.vlgmr.msra.gmra.mrb[0].mxu0 %v20_v17 }
  0xf5   :  { %v151_v18 = vpop.f32.mrb[0].mxu0 }
  0xf6   :  { %v153_v19 = vpop.f32.mrb[1].mxu0  ;;  %160 = vst [vmem:[%s283_s2] sm:$0xff] %v151_v18 }
  0xf7   :  { %v155_v20 = vpop.f32.mrb[2].mxu0  ;;  %161 = vst [vmem:[%s283_s2 + $0x8] sm:$0xff] %v153_v19 }
  0xf8   :  { %v156_v21 = vpop.f32.mrb[3].mxu0 }

// kernel: encoder_module_forward.17
= control target key start
LH: loop header
LB: loop body
LE: loop exit
PB: predicated region body
PF: predicated region fallthrough
CT: control target
= control target key end

     0   :  { %v176_v0 = vmov 0.0   ;;  %vm177_vm0 = vmmov 0   ;;  %s223_s1 = inlined_call_operand.vmem [shape: bf16[128,128], index: 1, kind: input, shape index: {}]   ;;  %s224_s0 = inlined_call_operand.vmem [shape: bf16[8,128], index: 0, kind: input, shape index: {}]   ;;  %s225_s2 = inlined_call_operand.vmem [shape: f32[8,128], index: 2, kind: output, shape index: {}]  }
   0x1   :  { %146 = vmatprep.subr.bf16.mxu0 %v176_v0  ;;  %v168_v1 = vld [vmem:[%s223_s1] sm:$0xff]   ;;  %162 = vmatprep.mubr.msk.bf16.mxu0 %vm177_vm0, %v176_v0  ;;  %v169_v2 = vld [vmem:[%s223_s1 + $0x8] sm:$0xff]   ;;  %v170_v3 = vld [vmem:[%s223_s1 + $0x10] sm:$0xff]  }
   0x2   :  { %147 = vmatpush3.bf16.msra.mxu0 %v168_v1  ;;  %v171_v4 = vld [vmem:[%s223_s1 + $0x18] sm:$0xff]   ;;  %v172_v5 = vld [vmem:[%s223_s1 + $0x20] sm:$0xff]   ;;  %v173_v6 = vld [vmem:[%s223_s1 + $0x28] sm:$0xff]  }
   0x3   :  { %148 = vmatprep.subr.bf16.mxu0 %v176_v0  ;;  %v174_v7 = vld [vmem:[%s223_s1 + $0x30] sm:$0xff]   ;;  %v175_v8 = vld [vmem:[%s223_s1 + $0x38] sm:$0xff]   ;;  %v18_v9 = vld [vmem:[%s224_s0] sm:$0xf] }
   0x6   :  { %149 = vmatpush3.bf16.msra.mxu0 %v169_v2 }
   0x7   :  { %150 = vmatprep.subr.bf16.mxu0 %v176_v0 }
   0xa   :  { %151 = vmatpush3.bf16.msra.mxu0 %v170_v3 }
   0xb   :  { %152 = vmatprep.subr.bf16.mxu0 %v176_v0 }
   0xe   :  { %153 = vmatpush3.bf16.msra.mxu0 %v171_v4 }
   0xf   :  { %154 = vmatprep.subr.bf16.mxu0 %v176_v0 }
  0x12   :  { %155 = vmatpush3.bf16.msra.mxu0 %v172_v5 }
  0x13   :  { %156 = vmatprep.subr.bf16.mxu0 %v176_v0 }
  0x16   :  { %157 = vmatpush3.bf16.msra.mxu0 %v173_v6 }
  0x17   :  { %158 = vmatprep.subr.bf16.mxu0 %v176_v0 }
  0x1a   :  { %159 = vmatpush3.bf16.msra.mxu0 %v174_v7 }
  0x1b   :  { %160 = vmatprep.subr.bf16.mxu0 %v176_v0 }
  0x1e   :  { %161 = vmatpush3.bf16.msra.mxu0 %v175_v8 }
  0x21   :  { %163 = vmatmul.mubr.bf16.vlgmr.msra.gmra.mrb[0].mxu0 %v18_v9 }
  0xf4   :  { %v117_v10 = vpop.f32.mrb[0].mxu0 }
  0xf5   :  { %v164_v11 = vpop.f32.mrb[1].mxu0  ;;  %124 = vst [vmem:[%s225_s2] sm:$0xff] %v117_v10 }
  0xf6   :  { %v120_v12 = vpop.f32.mrb[2].mxu0 }
  0xf7   :  { %v165_v13 = vpop.f32.mrb[3].mxu0 }

</bundles_post_ra>
